<compile_context>
chip_gen: v5e
topology: v5e:2x2
jax: 0.10.0
libtpu: 0.0.40
codegen_flags: <defaults>
</compile_context>

<pallas_src>
import math
import functools

import jax
import jax.numpy as jnp
from jax import lax
from jax.experimental import pallas as pl
from jax.experimental.pallas import tpu as pltpu

_LANE = 128
_SUBLANE = 8


def _round_up(v, m):
    return ((v + m - 1) // m) * m


def _pad_last(a, target):
    pad = target - a.shape[-1]
    if pad == 0:
        return a
    return jnp.pad(a, [(0, 0)] * (a.ndim - 1) + [(0, pad)])


def _tpu_generation():
    try:
        d = jax.devices()[0]
        if d.platform != "tpu":
            return None
        kind = d.device_kind.lower()
    except Exception:
        return None
    if "v5 lite" in kind or "v5e" in kind or "v5lite" in kind:
        return "v5e"
    if "v6" in kind:
        return "v6e"
    if "v7" in kind or "7x" in kind:
        return "v7x"
    return "other"


def _vmem_config(gen):
    # (tile-chooser budget, compiler vmem limit).  Generation aware:
    # v7x has only 64 MiB VMEM per TensorCore; v5e/v6e have 128 MiB.
    if gen == "v7x":
        return 26 * 2**20, 36 * 2**20
    if gen in ("v5e", "v6e", "other"):
        return 44 * 2**20, 64 * 2**20
    return 24 * 2**20, 40 * 2**20            # unknown / non-TPU: conservative


def _choose_tile_h(H, W, cin, hid, cout, budget_bytes,
                   in_b, w_b, conv_b, out_b, max_tile):
    """Largest row tile (divisor of H, <= max_tile) whose per-step live VMEM
    (double-buffered I/O blocks + weights + kernel intermediates, +25%
    headroom) fits the budget."""
    best = 1
    for th in range(1, max(1, max_tile) + 1):
        if H % th:
            continue
        nt, ne = th * W, (th + 2) * W
        io = 2 * ((nt + 2 * W) * cin * in_b + nt * cout * out_b)      # pipelined blocks
        weights = 2 * ((cin * hid + hid * cout) * w_b + (11 * hid + 2 * cout) * 4)
        inter = (ne * cin * in_b              # fused fc1 input (x_ext)
                 + ne * hid * 4               # h_ext (f32)
                 + 3 * ne * hid * conv_b      # conv-dtype h_ext + 2 column rolls
                 + 3 * nt * hid * conv_b      # per-kx tap accumulators
                 + 2 * nt * hid * 4           # conv, gelu (f32)
                 + nt * hid * w_b             # gelu cast for fc2
                 + nt * cout * 4)             # fc2 accumulator
        if (io + weights + inter) * 1.25 <= budget_bytes:
            best = th
    return best


def _mlp_kernel(x_ref, xt_ref, xb_ref, w1_ref, b1_ref, dww_ref, dwb_ref,
                w2_ref, b2_ref, o_ref, *, tile_h, W, conv_dtype, approx_gelu):
    f32 = jnp.float32
    t = pl.program_id(1)
    n_tiles = pl.num_programs(1)
    Nt = tile_h * W                  # tokens in this row tile
    Ne = (tile_h + 2) * W            # tokens incl. +/-1-row halo
    cin = x_ref.shape[-1]

    w1 = w1_ref[...]
    b1 = b1_ref[...]
    w9 = dww_ref[...].astype(conv_dtype)     # (9, hidden), row = ky*3 + kx
    dwb = dwb_ref[...]
    w2 = w2_ref[...]
    b2 = b2_ref[...]

    # ---- fc1: one fused MXU matmul over main tile + the two halo rows ----
    x_ext = jnp.concatenate(
        [xt_ref[0, 0], x_ref[0].reshape(Nt, cin), xb_ref[0, 0]], axis=0)      # (Ne, cin)
    h_raw = jnp.dot(x_ext, w1, preferred_element_type=f32) + b1               # (Ne, hid)

    # Zero the halo rows at the global image borders so the 3x3 conv sees zero
    # padding there (matches PyTorch padding=1).  Interior tiles: scale == 1.
    # NOTE: do not remove -- the clamped halo BlockSpecs rely on this zeroing.
    top_scale = (t > 0).astype(f32)
    bot_scale = (t < n_tiles - 1).astype(f32)
    ridx = lax.broadcasted_iota(jnp.int32, (Ne, 1), 0)
    scale = jnp.where(ridx < W, top_scale,
                      jnp.where(ridx >= (tile_h + 1) * W, bot_scale, 1.0))
    h_ext = (h_raw * scale).astype(conv_dtype)                                # (Ne, hid)

    # ---- 3x3 depthwise conv in the flat (tokens, hidden) layout ----
    # Only 2 XLU rolls (column shift +/-1); the three ky taps per column shift
    # are sublane-aligned static slices (W % 8 == 0 enforced in the wrapper).
    # Border masks applied once per column-shifted accumulator.  Wrap-around
    # values produced by the rolls only reach outputs at c==0 / c==W-1 and are
    # therefore always zeroed by m_left / m_right (re-verified for this tap
    # scheme); vertical padding comes from the zeroed halo rows.
    h_m1 = pltpu.roll(h_ext, shift=1, axis=0)          # h_m1[i] = h_ext[i-1]
    h_p1 = pltpu.roll(h_ext, shift=Ne - 1, axis=0)     # h_p1[i] = h_ext[i+1]

    def taps(src, k0, k1, k2):
        return (src[0:Nt] * w9[k0]
                + src[W:W + Nt] * w9[k1]
                + src[2 * W:2 * W + Nt] * w9[k2])

    col = lax.broadcasted_iota(jnp.int32, (Nt, 1), 0) % W
    m_left = (col > 0).astype(f32)              # dx = -1 valid
    m_right = (col < (W - 1)).astype(f32)       # dx = +1 valid

    conv = (taps(h_ext, 1, 4, 7).astype(f32)
            + m_left * taps(h_m1, 0, 3, 6).astype(f32)
            + m_right * taps(h_p1, 2, 5, 8).astype(f32)
            + dwb)                                                            # (Nt, hid)

    # ---- GELU ----
    if approx_gelu:
        # tanh approximation runs on the EUP (otherwise-idle slot); not
        # bit-exact vs torch.nn.GELU but within ~3e-4 absolute.
        c0 = math.sqrt(2.0 / math.pi)
        g = 0.5 * conv * (1.0 + jnp.tanh(c0 * (conv + 0.044715 * conv * conv * conv)))
    else:
        # exact erf GELU (matches torch.nn.GELU default).
        g = 0.5 * conv * (1.0 + lax.erf(conv * (1.0 / math.sqrt(2.0))))

    # TODO(synk): dropout omitted -- module default drop=0.0 (identity in eval).

    # ---- fc2 (MXU) ----
    out = jnp.dot(g.astype(w2.dtype), w2, preferred_element_type=f32) + b2
    o_ref[0] = out.reshape(tile_h, W, out.shape[-1]).astype(o_ref.dtype)


def mlp_pallas(x, w1, b1, dw_w, dw_b, w2, b2, *, tile_h=None, compute_dtype=None,
               conv_dtype=None, approx_gelu=False, out_dtype=None,
               vmem_budget_bytes=None, vmem_limit_bytes=None,
               single_buffer_weights=True):
    """x: (B, N, Cin). Weights: w1 (Cin,hid), b1 (1,hid), dw_w (9,hid) with
    row = ky*3+kx, dw_b (1,hid), w2 (hid,Cout), b2 (1,Cout).

    compute_dtype : MXU feeding dtype for fc1/fc2 (f32 accumulation).  Default
        bf16 (every current TPU generation has a bf16 MXU); pass jnp.float32
        for bit-exact matmuls.
    conv_dtype    : dtype of the depthwise-conv roll/tap path.  Default f32
        (safe everywhere, no sub-32-bit roll lowering risk); jnp.bfloat16
        halves XLU/VPU traffic on v6e/v7x if desired.
    approx_gelu   : tanh GELU (EUP) instead of the exact erf VALU polynomial.
    """
    B, N, Cin = x.shape
    hidden = w1.shape[1]
    Cout = w2.shape[1]
    H = int(math.sqrt(N))
    W = H
    assert H * W == N, "N must be a perfect square"
    assert W % _SUBLANE == 0, (
        "W must be a multiple of 8 so the in-kernel (tile_h, W, C) <-> "
        "(tokens, C) reshapes and row-offset conv slices are sublane-aligned "
        "(otherwise Mosaic inserts relayout copies on the hot path)")

    gen = _tpu_generation()
    if compute_dtype is None:
        compute_dtype = jnp.bfloat16
    if conv_dtype is None:
        conv_dtype = jnp.float32
    if out_dtype is None:
        out_dtype = x.dtype
    auto_budget, auto_limit = _vmem_config(gen)
    if vmem_budget_bytes is None:
        vmem_budget_bytes = auto_budget
    if vmem_limit_bytes is None:
        vmem_limit_bytes = auto_limit

    cin_p = _round_up(Cin, _LANE)
    hid_p = _round_up(hidden, _LANE)
    cout_p = _round_up(Cout, _LANE)

    # Lane-dense channel dims (padding skipped when already lane multiples).
    # Zero-padded channels are mathematically inert: the padded weight/bias
    # entries are zero end-to-end, so results are unchanged.
    xp = _pad_last(x.reshape(B, H, W, Cin), cin_p).astype(compute_dtype)
    w1p = _pad_last(jnp.pad(w1, ((0, cin_p - Cin), (0, 0))), hid_p).astype(compute_dtype)
    b1p = _pad_last(b1, hid_p).astype(jnp.float32)
    dwwp = _pad_last(dw_w, hid_p).astype(jnp.float32)
    dwbp = _pad_last(dw_b, hid_p).astype(jnp.float32)
    w2p = _pad_last(jnp.pad(w2, ((0, hid_p - hidden), (0, 0))), cout_p).astype(compute_dtype)
    b2p = _pad_last(b2, cout_p).astype(jnp.float32)

    if tile_h is None:
        max_tile = H
        if gen == "v7x" and B == 1 and H >= 2:
            # keep >= 2 grid units so both v7x TensorCores get work
            max_tile = max(1, H // 2)
        tile_h = _choose_tile_h(
            H, W, cin_p, hid_p, cout_p, vmem_budget_bytes,
            jnp.dtype(compute_dtype).itemsize, jnp.dtype(compute_dtype).itemsize,
            jnp.dtype(conv_dtype).itemsize, jnp.dtype(out_dtype).itemsize,
            max_tile)
    assert H % tile_h == 0, "tile_h must divide H"
    n_tiles = H // tile_h

    kernel = functools.partial(_mlp_kernel, tile_h=tile_h, W=W,
                               conv_dtype=conv_dtype, approx_gelu=approx_gelu)

    def build(single_buf):
        def wspec(shape):
            if single_buf:
                # constant index_map -> resident weights; single-buffer them to
                # reclaim the second (wasted) pipeline buffer.
                return pl.BlockSpec(shape, lambda b, t: (0,) * len(shape),
                                    pipeline_mode=pl.Buffered(1))
            return pl.BlockSpec(shape, lambda b, t: (0,) * len(shape))

        return pl.pallas_call(
            kernel,
            out_shape=jax.ShapeDtypeStruct((B, H, W, cout_p), out_dtype),
            grid_spec=pltpu.PrefetchScalarGridSpec(
                num_scalar_prefetch=0,
                grid=(B, n_tiles),
                in_specs=[
                    # main row tile of the input image
                    pl.BlockSpec((1, tile_h, W, cin_p), lambda b, t: (b, t, 0, 0)),
                    # +/-1-row halo rows (clamped at image borders; zeroed in-kernel)
                    pl.BlockSpec((1, 1, W, cin_p),
                                 lambda b, t: (b, jnp.maximum(t * tile_h - 1, 0), 0, 0)),
                    pl.BlockSpec((1, 1, W, cin_p),
                                 lambda b, t: (b, jnp.minimum((t + 1) * tile_h, H - 1), 0, 0)),
                    # weights: constant index_map -> stay resident in VMEM
                    wspec((cin_p, hid_p)),
                    wspec((1, hid_p)),
                    wspec((9, hid_p)),
                    wspec((1, hid_p)),
                    wspec((hid_p, cout_p)),
                    wspec((1, cout_p)),
                ],
                out_specs=pl.BlockSpec((1, tile_h, W, cout_p),
                                       lambda b, t: (b, t, 0, 0)),
            ),
            compiler_params=pltpu.CompilerParams(
                dimension_semantics=("parallel", "parallel"),
                vmem_limit_bytes=vmem_limit_bytes),
        )

    args = (xp, xp, xp, w1p, b1p, dwwp, dwbp, w2p, b2p)
    if single_buffer_weights:
        try:
            out = build(True)(*args)
        except Exception:
            # pipeline_mode=pl.Buffered(1) unsupported in this JAX -> default buffering
            out = build(False)(*args)
    else:
        out = build(False)(*args)

    out = out.reshape(B, N, cout_p)
    if cout_p != Cout:
        out = out[:, :, :Cout]
    return out


def mlp_reference(x, w1, b1, dw_w, dw_b, w2, b2):
    """Plain-JAX reference mirroring the PyTorch Mlp (fc1 -> DWConv -> GELU -> fc2)."""
    B, N, Cin = x.shape
    hidden = w1.shape[1]
    H = W = int(math.sqrt(N))
    h = jnp.einsum('bnc,ch->bnh', x, w1) + b1                              # fc1
    h_nchw = jnp.transpose(h, (0, 2, 1)).reshape(B, hidden, H, W)
    w_conv = jnp.transpose(dw_w.reshape(3, 3, hidden), (2, 0, 1))[:, None]  # (hid,1,3,3)
    conv = lax.conv_general_dilated(
        h_nchw, w_conv, window_strides=(1, 1), padding='SAME',
        feature_group_count=hidden,
        dimension_numbers=('NCHW', 'OIHW', 'NCHW'))
    conv = conv + dw_b.reshape(1, hidden, 1, 1)
    conv = jnp.transpose(conv.reshape(B, hidden, N), (0, 2, 1))             # (B,N,hid)
    g = 0.5 * conv * (1.0 + lax.erf(conv / math.sqrt(2.0)))                 # exact GELU
    out = jnp.einsum('bnh,ho->bno', g, w2) + b2                             # fc2
    return out


if __name__ == "__main__":
    B, H, W = 2, 8, 8
    N = H * W
    in_features, hidden_features, out_features = 16, 32, 16

    key = jax.random.PRNGKey(0)
    kx, k1, kb1, kdw, kdb, k2, kb2 = jax.random.split(key, 7)

    x = jax.random.normal(kx, (B, N, in_features), dtype=jnp.float32)

    lim1 = 1.0 / math.sqrt(in_features)
    w1 = jax.random.uniform(k1, (in_features, hidden_features), jnp.float32, -lim1, lim1)
    b1 = jax.random.uniform(kb1, (1, hidden_features), jnp.float32, -lim1, lim1)

    limd = 1.0 / math.sqrt(9.0)   # depthwise: fan_in = 1*3*3
    dw_w = jax.random.uniform(kdw, (9, hidden_features), jnp.float32, -limd, limd)
    dw_b = jax.random.uniform(kdb, (1, hidden_features), jnp.float32, -limd, limd)

    lim2 = 1.0 / math.sqrt(hidden_features)
    w2 = jax.random.uniform(k2, (hidden_features, out_features), jnp.float32, -lim2, lim2)
    b2 = jax.random.uniform(kb2, (1, out_features), jnp.float32, -lim2, lim2)

    ref = mlp_reference(x, w1, b1, dw_w, dw_b, w2, b2)

    # 1) f32 MXU feeding, exact erf GELU, explicit 2-tile grid -> exercises the
    #    fused-fc1 halo path + 2-roll conv with a tight tolerance.
    out_f32 = jax.block_until_ready(
        mlp_pallas(x, w1, b1, dw_w, dw_b, w2, b2, tile_h=4,
                   compute_dtype=jnp.float32))
    assert out_f32.shape == (B, N, out_features)
    assert jnp.allclose(out_f32, ref, atol=1e-4, rtol=1e-4), "f32 mismatch"

    # 2) defaults: bf16 MXU feeding (f32 accumulation) + auto tile from the
    #    generation-aware VMEM budget.
    out_auto = jax.block_until_ready(mlp_pallas(x, w1, b1, dw_w, dw_b, w2, b2))
    assert out_auto.shape == (B, N, out_features)
    assert jnp.allclose(out_auto, ref, atol=5e-2, rtol=5e-2), "bf16 auto mismatch"

    # 3) tanh-approximate GELU (EUP path) + bf16 feeding, tiled.
    out_fast = jax.block_until_ready(
        mlp_pallas(x, w1, b1, dw_w, dw_b, w2, b2, tile_h=4, approx_gelu=True))
    assert jnp.allclose(out_fast, ref, atol=5e-2, rtol=5e-2), "approx-gelu mismatch"

    print("KERNEL_OK")
</pallas_src>

<mosaic_0001>
module attributes {stable_mosaic.version = 11 : i64} {
  func.func @_mlp_kernel(%arg0: i32, %arg1: i32, %arg2: memref<1x4x8x128xf32, #tpu.memory_space<vmem>>, %arg3: memref<1x1x8x128xf32, #tpu.memory_space<vmem>>, %arg4: memref<1x1x8x128xf32, #tpu.memory_space<vmem>>, %arg5: memref<128x128xf32, #tpu.memory_space<vmem>>, %arg6: memref<1x128xf32, #tpu.memory_space<vmem>>, %arg7: memref<9x128xf32, #tpu.memory_space<vmem>>, %arg8: memref<1x128xf32, #tpu.memory_space<vmem>>, %arg9: memref<128x128xf32, #tpu.memory_space<vmem>>, %arg10: memref<1x128xf32, #tpu.memory_space<vmem>>, %arg11: memref<1x4x8x128xf32, #tpu.memory_space<vmem>>) attributes {dimension_semantics = [#tpu.dimension_semantics<parallel>, #tpu.dimension_semantics<parallel>], iteration_bounds = array<i64: 2, 2>, scalar_prefetch = 0 : i64, scratch_operands = 0 : i64, tpu.core_type = #tpu.core_type<tc>, window_params = [{transform_indices = @transform_0, window_bounds = array<i64: 1, 4, 8, 128>}, {transform_indices = @transform_1, window_bounds = array<i64: 1, 1, 8, 128>}, {transform_indices = @transform_2, window_bounds = array<i64: 1, 1, 8, 128>}, {pipeline_mode = #tpu.pipeline_mode<synchronous>, transform_indices = @transform_3, window_bounds = array<i64: 128, 128>}, {pipeline_mode = #tpu.pipeline_mode<synchronous>, transform_indices = @transform_4, window_bounds = array<i64: 1, 128>}, {pipeline_mode = #tpu.pipeline_mode<synchronous>, transform_indices = @transform_5, window_bounds = array<i64: 9, 128>}, {pipeline_mode = #tpu.pipeline_mode<synchronous>, transform_indices = @transform_6, window_bounds = array<i64: 1, 128>}, {pipeline_mode = #tpu.pipeline_mode<synchronous>, transform_indices = @transform_7, window_bounds = array<i64: 128, 128>}, {pipeline_mode = #tpu.pipeline_mode<synchronous>, transform_indices = @transform_8, window_bounds = array<i64: 1, 128>}, {transform_indices = @transform_9, window_bounds = array<i64: 1, 4, 8, 128>}]} {
    %c0 = arith.constant 0 : index
    %c0_0 = arith.constant 0 : index
    %0 = vector.load %arg5[%c0, %c0_0] : memref<128x128xf32, #tpu.memory_space<vmem>>, vector<128x128xf32>
    %c0_1 = arith.constant 0 : index
    %c0_2 = arith.constant 0 : index
    %1 = vector.load %arg6[%c0_1, %c0_2] : memref<1x128xf32, #tpu.memory_space<vmem>>, vector<1x128xf32>
    %c0_3 = arith.constant 0 : index
    %c0_4 = arith.constant 0 : index
    %2 = vector.load %arg7[%c0_3, %c0_4] : memref<9x128xf32, #tpu.memory_space<vmem>>, vector<9x128xf32>
    %c0_5 = arith.constant 0 : index
    %c0_6 = arith.constant 0 : index
    %3 = vector.load %arg8[%c0_5, %c0_6] : memref<1x128xf32, #tpu.memory_space<vmem>>, vector<1x128xf32>
    %c0_7 = arith.constant 0 : index
    %c0_8 = arith.constant 0 : index
    %4 = vector.load %arg9[%c0_7, %c0_8] : memref<128x128xf32, #tpu.memory_space<vmem>>, vector<128x128xf32>
    %c0_9 = arith.constant 0 : index
    %c0_10 = arith.constant 0 : index
    %5 = vector.load %arg10[%c0_9, %c0_10] : memref<1x128xf32, #tpu.memory_space<vmem>>, vector<1x128xf32>
    %c0_11 = arith.constant 0 : index
    %c0_12 = arith.constant 0 : index
    %c0_13 = arith.constant 0 : index
    %c0_14 = arith.constant 0 : index
    %6 = vector.load %arg3[%c0_11, %c0_12, %c0_13, %c0_14] : memref<1x1x8x128xf32, #tpu.memory_space<vmem>>, vector<1x1x8x128xf32>
    %7 = vector.shape_cast %6 : vector<1x1x8x128xf32> to vector<8x128xf32>
    %c0_15 = arith.constant 0 : index
    %c0_16 = arith.constant 0 : index
    %c0_17 = arith.constant 0 : index
    %c0_18 = arith.constant 0 : index
    %8 = vector.load %arg2[%c0_15, %c0_16, %c0_17, %c0_18] : memref<1x4x8x128xf32, #tpu.memory_space<vmem>>, vector<1x4x8x128xf32>
    %9 = vector.shape_cast %8 : vector<1x4x8x128xf32> to vector<4x8x128xf32>
    %10 = vector.shape_cast %9 : vector<4x8x128xf32> to vector<32x128xf32>
    %c0_19 = arith.constant 0 : index
    %c0_20 = arith.constant 0 : index
    %c0_21 = arith.constant 0 : index
    %c0_22 = arith.constant 0 : index
    %11 = vector.load %arg4[%c0_19, %c0_20, %c0_21, %c0_22] : memref<1x1x8x128xf32, #tpu.memory_space<vmem>>, vector<1x1x8x128xf32>
    %12 = vector.shape_cast %11 : vector<1x1x8x128xf32> to vector<8x128xf32>
    %13 = tpu.concatenate %7, %10, %12 in 0 : vector<8x128xf32>, vector<32x128xf32>, vector<8x128xf32> -> vector<48x128xf32>
    %cst = arith.constant dense<0.000000e+00> : vector<48x128xf32>
    %14 = tpu.matmul %13, %0, %cst {dimension_numbers = #tpu.dot_dimension_numbers<[1], [0], [0], [1], [0, 0, 1, 1], [], []>} : vector<48x128xf32>, vector<128x128xf32>, vector<48x128xf32> -> vector<48x128xf32>
    %15 = vector.broadcast %1 : vector<1x128xf32> to vector<48x128xf32>
    %16 = arith.addf %14, %15 : vector<48x128xf32>
    %c0_i32 = arith.constant 0 : i32
    %17 = arith.cmpi sgt, %arg1, %c0_i32 : i32
    %18 = arith.extui %17 : i1 to i32
    %19 = arith.sitofp %18 : i32 to f32
    %c1_i32 = arith.constant 1 : i32
    %20 = arith.cmpi slt, %arg1, %c1_i32 : i32
    %21 = arith.extui %20 : i1 to i32
    %22 = arith.sitofp %21 : i32 to f32
    %23 = tpu.iota {dimensions = array<i32: 0>} : vector<48x1xi32>
    %c8_i32 = arith.constant 8 : i32
    %24 = vector.broadcast %c8_i32 : i32 to vector<48x1xi32>
    %25 = arith.cmpi slt, %23, %24 : vector<48x1xi32>
    %c40_i32 = arith.constant 40 : i32
    %26 = vector.broadcast %c40_i32 : i32 to vector<48x1xi32>
    %27 = arith.cmpi sge, %23, %26 : vector<48x1xi32>
    %cst_23 = arith.constant 1.000000e+00 : f32
    %28 = vector.broadcast %22 : f32 to vector<48x1xf32>
    %29 = vector.broadcast %cst_23 : f32 to vector<48x1xf32>
    %30 = arith.select %27, %28, %29 : vector<48x1xi1>, vector<48x1xf32>
    %31 = vector.broadcast %19 : f32 to vector<48x1xf32>
    %32 = arith.select %25, %31, %30 : vector<48x1xi1>, vector<48x1xf32>
    %33 = vector.broadcast %32 : vector<48x1xf32> to vector<48x128xf32>
    %34 = arith.mulf %16, %33 : vector<48x128xf32>
    %c1_i32_24 = arith.constant 1 : i32
    %35 = tpu.dynamic_rotate %34 by %c1_i32_24 dim 0 : vector<48x128xf32>, i32 -> vector<48x128xf32>
    %c47_i32 = arith.constant 47 : i32
    %36 = tpu.dynamic_rotate %34 by %c47_i32 dim 0 : vector<48x128xf32>, i32 -> vector<48x128xf32>
    %37 = tpu.iota {dimensions = array<i32: 0>} : vector<32x1xi32>
    %c8_i32_25 = arith.constant 8 : i32
    %c0_i32_26 = arith.constant 0 : i32
    %38 = arith.cmpi eq, %c8_i32_25, %c0_i32_26 : i32
    %c1_i32_27 = arith.constant 1 : i32
    %39 = arith.select %38, %c1_i32_27, %c8_i32_25 : i32
    %40 = vector.broadcast %39 : i32 to vector<32x1xi32>
    %41 = arith.remsi %37, %40 : vector<32x1xi32>
    %c0_i32_28 = arith.constant 0 : i32
    %42 = vector.broadcast %c0_i32_28 : i32 to vector<32x1xi32>
    %43 = arith.cmpi ne, %41, %42 : vector<32x1xi32>
    %c0_i32_29 = arith.constant 0 : i32
    %44 = vector.broadcast %c0_i32_29 : i32 to vector<32x1xi32>
    %45 = arith.cmpi slt, %41, %44 : vector<32x1xi32>
    %c0_i32_30 = arith.constant 0 : i32
    %46 = arith.cmpi slt, %39, %c0_i32_30 : i32
    %47 = vector.broadcast %46 : i1 to vector<32x1xi1>
    %48 = vector.broadcast %47 : vector<32x1xi1> to vector<32x1xi1>
    %49 = arith.xori %45, %48 : vector<32x1xi1>
    %50 = arith.andi %49, %43 : vector<32x1xi1>
    %51 = vector.broadcast %39 : i32 to vector<32x1xi32>
    %52 = arith.addi %41, %51 : vector<32x1xi32>
    %53 = arith.select %50, %52, %41 : vector<32x1xi1>, vector<32x1xi32>
    %c0_i32_31 = arith.constant 0 : i32
    %54 = vector.broadcast %c0_i32_31 : i32 to vector<32x1xi32>
    %55 = arith.cmpi sgt, %53, %54 : vector<32x1xi32>
    %56 = arith.extui %55 : vector<32x1xi1> to vector<32x1xi32>
    %57 = arith.sitofp %56 : vector<32x1xi32> to vector<32x1xf32>
    %c7_i32 = arith.constant 7 : i32
    %58 = vector.broadcast %c7_i32 : i32 to vector<32x1xi32>
    %59 = arith.cmpi slt, %53, %58 : vector<32x1xi32>
    %60 = arith.extui %59 : vector<32x1xi1> to vector<32x1xi32>
    %61 = arith.sitofp %60 : vector<32x1xi32> to vector<32x1xf32>
    %62 = vector.extract_strided_slice %34 {offsets = [0, 0], sizes = [32, 128], strides = [1, 1]} : vector<48x128xf32> to vector<32x128xf32>
    %63 = vector.extract_strided_slice %2 {offsets = [1, 0], sizes = [1, 128], strides = [1, 1]} : vector<9x128xf32> to vector<1x128xf32>
    %64 = vector.shape_cast %63 : vector<1x128xf32> to vector<128xf32>
    %65 = vector.shape_cast %64 : vector<128xf32> to vector<1x128xf32>
    %66 = vector.broadcast %65 : vector<1x128xf32> to vector<32x128xf32>
    %67 = arith.mulf %62, %66 : vector<32x128xf32>
    %68 = vector.extract_strided_slice %34 {offsets = [8, 0], sizes = [32, 128], strides = [1, 1]} : vector<48x128xf32> to vector<32x128xf32>
    %69 = vector.extract_strided_slice %2 {offsets = [4, 0], sizes = [1, 128], strides = [1, 1]} : vector<9x128xf32> to vector<1x128xf32>
    %70 = vector.shape_cast %69 : vector<1x128xf32> to vector<128xf32>
    %71 = vector.shape_cast %70 : vector<128xf32> to vector<1x128xf32>
    %72 = vector.broadcast %71 : vector<1x128xf32> to vector<32x128xf32>
    %73 = arith.mulf %68, %72 : vector<32x128xf32>
    %74 = arith.addf %67, %73 : vector<32x128xf32>
    %75 = vector.extract_strided_slice %34 {offsets = [16, 0], sizes = [32, 128], strides = [1, 1]} : vector<48x128xf32> to vector<32x128xf32>
    %76 = vector.extract_strided_slice %2 {offsets = [7, 0], sizes = [1, 128], strides = [1, 1]} : vector<9x128xf32> to vector<1x128xf32>
    %77 = vector.shape_cast %76 : vector<1x128xf32> to vector<128xf32>
    %78 = vector.shape_cast %77 : vector<128xf32> to vector<1x128xf32>
    %79 = vector.broadcast %78 : vector<1x128xf32> to vector<32x128xf32>
    %80 = arith.mulf %75, %79 : vector<32x128xf32>
    %81 = arith.addf %74, %80 : vector<32x128xf32>
    %82 = vector.extract_strided_slice %35 {offsets = [0, 0], sizes = [32, 128], strides = [1, 1]} : vector<48x128xf32> to vector<32x128xf32>
    %83 = vector.extract_strided_slice %2 {offsets = [0, 0], sizes = [1, 128], strides = [1, 1]} : vector<9x128xf32> to vector<1x128xf32>
    %84 = vector.shape_cast %83 : vector<1x128xf32> to vector<128xf32>
    %85 = vector.shape_cast %84 : vector<128xf32> to vector<1x128xf32>
    %86 = vector.broadcast %85 : vector<1x128xf32> to vector<32x128xf32>
    %87 = arith.mulf %82, %86 : vector<32x128xf32>
    %88 = vector.extract_strided_slice %35 {offsets = [8, 0], sizes = [32, 128], strides = [1, 1]} : vector<48x128xf32> to vector<32x128xf32>
    %89 = vector.extract_strided_slice %2 {offsets = [3, 0], sizes = [1, 128], strides = [1, 1]} : vector<9x128xf32> to vector<1x128xf32>
    %90 = vector.shape_cast %89 : vector<1x128xf32> to vector<128xf32>
    %91 = vector.shape_cast %90 : vector<128xf32> to vector<1x128xf32>
    %92 = vector.broadcast %91 : vector<1x128xf32> to vector<32x128xf32>
    %93 = arith.mulf %88, %92 : vector<32x128xf32>
    %94 = arith.addf %87, %93 : vector<32x128xf32>
    %95 = vector.extract_strided_slice %35 {offsets = [16, 0], sizes = [32, 128], strides = [1, 1]} : vector<48x128xf32> to vector<32x128xf32>
    %96 = vector.extract_strided_slice %2 {offsets = [6, 0], sizes = [1, 128], strides = [1, 1]} : vector<9x128xf32> to vector<1x128xf32>
    %97 = vector.shape_cast %96 : vector<1x128xf32> to vector<128xf32>
    %98 = vector.shape_cast %97 : vector<128xf32> to vector<1x128xf32>
    %99 = vector.broadcast %98 : vector<1x128xf32> to vector<32x128xf32>
    %100 = arith.mulf %95, %99 : vector<32x128xf32>
    %101 = arith.addf %94, %100 : vector<32x128xf32>
    %102 = vector.broadcast %57 : vector<32x1xf32> to vector<32x128xf32>
    %103 = arith.mulf %102, %101 : vector<32x128xf32>
    %104 = arith.addf %81, %103 : vector<32x128xf32>
    %105 = vector.extract_strided_slice %36 {offsets = [0, 0], sizes = [32, 128], strides = [1, 1]} : vector<48x128xf32> to vector<32x128xf32>
    %106 = vector.extract_strided_slice %2 {offsets = [2, 0], sizes = [1, 128], strides = [1, 1]} : vector<9x128xf32> to vector<1x128xf32>
    %107 = vector.shape_cast %106 : vector<1x128xf32> to vector<128xf32>
    %108 = vector.shape_cast %107 : vector<128xf32> to vector<1x128xf32>
    %109 = vector.broadcast %108 : vector<1x128xf32> to vector<32x128xf32>
    %110 = arith.mulf %105, %109 : vector<32x128xf32>
    %111 = vector.extract_strided_slice %36 {offsets = [8, 0], sizes = [32, 128], strides = [1, 1]} : vector<48x128xf32> to vector<32x128xf32>
    %112 = vector.extract_strided_slice %2 {offsets = [5, 0], sizes = [1, 128], strides = [1, 1]} : vector<9x128xf32> to vector<1x128xf32>
    %113 = vector.shape_cast %112 : vector<1x128xf32> to vector<128xf32>
    %114 = vector.shape_cast %113 : vector<128xf32> to vector<1x128xf32>
    %115 = vector.broadcast %114 : vector<1x128xf32> to vector<32x128xf32>
    %116 = arith.mulf %111, %115 : vector<32x128xf32>
    %117 = arith.addf %110, %116 : vector<32x128xf32>
    %118 = vector.extract_strided_slice %36 {offsets = [16, 0], sizes = [32, 128], strides = [1, 1]} : vector<48x128xf32> to vector<32x128xf32>
    %119 = vector.extract_strided_slice %2 {offsets = [8, 0], sizes = [1, 128], strides = [1, 1]} : vector<9x128xf32> to vector<1x128xf32>
    %120 = vector.shape_cast %119 : vector<1x128xf32> to vector<128xf32>
    %121 = vector.shape_cast %120 : vector<128xf32> to vector<1x128xf32>
    %122 = vector.broadcast %121 : vector<1x128xf32> to vector<32x128xf32>
    %123 = arith.mulf %118, %122 : vector<32x128xf32>
    %124 = arith.addf %117, %123 : vector<32x128xf32>
    %125 = vector.broadcast %61 : vector<32x1xf32> to vector<32x128xf32>
    %126 = arith.mulf %125, %124 : vector<32x128xf32>
    %127 = arith.addf %104, %126 : vector<32x128xf32>
    %128 = vector.broadcast %3 : vector<1x128xf32> to vector<32x128xf32>
    %129 = arith.addf %127, %128 : vector<32x128xf32>
    %cst_32 = arith.constant 5.000000e-01 : f32
    %130 = vector.broadcast %cst_32 : f32 to vector<32x128xf32>
    %131 = arith.mulf %130, %129 : vector<32x128xf32>
    %cst_33 = arith.constant 0.707106769 : f32
    %132 = vector.broadcast %cst_33 : f32 to vector<32x128xf32>
    %133 = arith.mulf %129, %132 : vector<32x128xf32>
    %134 = math.erf %133 : vector<32x128xf32>
    %cst_34 = arith.constant 1.000000e+00 : f32
    %135 = vector.broadcast %cst_34 : f32 to vector<32x128xf32>
    %136 = arith.addf %135, %134 : vector<32x128xf32>
    %137 = arith.mulf %131, %136 : vector<32x128xf32>
    %cst_35 = arith.constant dense<0.000000e+00> : vector<32x128xf32>
    %138 = tpu.matmul %137, %4, %cst_35 {dimension_numbers = #tpu.dot_dimension_numbers<[1], [0], [0], [1], [0, 0, 1, 1], [], []>} : vector<32x128xf32>, vector<128x128xf32>, vector<32x128xf32> -> vector<32x128xf32>
    %139 = vector.broadcast %5 : vector<1x128xf32> to vector<32x128xf32>
    %140 = arith.addf %138, %139 : vector<32x128xf32>
    %141 = vector.shape_cast %140 : vector<32x128xf32> to vector<4x8x128xf32>
    %c0_36 = arith.constant 0 : index
    %c0_37 = arith.constant 0 : index
    %c0_38 = arith.constant 0 : index
    %c0_39 = arith.constant 0 : index
    %142 = vector.load %arg11[%c0_36, %c0_37, %c0_38, %c0_39] : memref<1x4x8x128xf32, #tpu.memory_space<vmem>>, vector<1x4x8x128xf32>
    %143 = vector.shape_cast %142 : vector<1x4x8x128xf32> to vector<4x8x128xf32>
    %144 = vector.shape_cast %141 : vector<4x8x128xf32> to vector<1x4x8x128xf32>
    tpu.vector_store %arg11[%c0_36, %c0_37, %c0_38, %c0_39], %144 {strides = array<i32>} : memref<1x4x8x128xf32, #tpu.memory_space<vmem>>, vector<1x4x8x128xf32>,
    return
  }
  func.func @transform_0(%arg0: i32, %arg1: i32) -> (i32, i32, i32, i32) {
    %c0_i32 = arith.constant 0 : i32
    %c0_i32_0 = arith.constant 0 : i32
    %c0_i32_1 = arith.constant 0 : i32
    return %arg0, %arg1, %c0_i32, %c0_i32_0 : i32, i32, i32, i32
  }
  func.func @transform_1(%arg0: i32, %arg1: i32) -> (i32, i32, i32, i32) {
    %c4_i32 = arith.constant 4 : i32
    %0 = arith.muli %arg1, %c4_i32 : i32
    %c1_i32 = arith.constant 1 : i32
    %1 = arith.subi %0, %c1_i32 : i32
    %c0_i32 = arith.constant 0 : i32
    %2 = arith.maxsi %1, %c0_i32 : i32
    %c0_i32_0 = arith.constant 0 : i32
    %c0_i32_1 = arith.constant 0 : i32
    %c0_i32_2 = arith.constant 0 : i32
    return %arg0, %2, %c0_i32_0, %c0_i32_1 : i32, i32, i32, i32
  }
  func.func @transform_2(%arg0: i32, %arg1: i32) -> (i32, i32, i32, i32) {
    %c1_i32 = arith.constant 1 : i32
    %0 = arith.addi %arg1, %c1_i32 : i32
    %c4_i32 = arith.constant 4 : i32
    %1 = arith.muli %0, %c4_i32 : i32
    %c7_i32 = arith.constant 7 : i32
    %2 = arith.minsi %1, %c7_i32 : i32
    %c0_i32 = arith.constant 0 : i32
    %c0_i32_0 = arith.constant 0 : i32
    %c0_i32_1 = arith.constant 0 : i32
    return %arg0, %2, %c0_i32, %c0_i32_0 : i32, i32, i32, i32
  }
  func.func @transform_3(%arg0: i32, %arg1: i32) -> (i32, i32) {
    %c0_i32 = arith.constant 0 : i32
    %c0_i32_0 = arith.constant 0 : i32
    %c0_i32_1 = arith.constant 0 : i32
    return %c0_i32, %c0_i32_0 : i32, i32
  }
  func.func @transform_4(%arg0: i32, %arg1: i32) -> (i32, i32) {
    %c0_i32 = arith.constant 0 : i32
    %c0_i32_0 = arith.constant 0 : i32
    %c0_i32_1 = arith.constant 0 : i32
    return %c0_i32, %c0_i32_0 : i32, i32
  }
  func.func @transform_5(%arg0: i32, %arg1: i32) -> (i32, i32) {
    %c0_i32 = arith.constant 0 : i32
    %c0_i32_0 = arith.constant 0 : i32
    %c0_i32_1 = arith.constant 0 : i32
    return %c0_i32, %c0_i32_0 : i32, i32
  }
  func.func @transform_6(%arg0: i32, %arg1: i32) -> (i32, i32) {
    %c0_i32 = arith.constant 0 : i32
    %c0_i32_0 = arith.constant 0 : i32
    %c0_i32_1 = arith.constant 0 : i32
    return %c0_i32, %c0_i32_0 : i32, i32
  }
  func.func @transform_7(%arg0: i32, %arg1: i32) -> (i32, i32) {
    %c0_i32 = arith.constant 0 : i32
    %c0_i32_0 = arith.constant 0 : i32
    %c0_i32_1 = arith.constant 0 : i32
    return %c0_i32, %c0_i32_0 : i32, i32
  }
  func.func @transform_8(%arg0: i32, %arg1: i32) -> (i32, i32) {
    %c0_i32 = arith.constant 0 : i32
    %c0_i32_0 = arith.constant 0 : i32
    %c0_i32_1 = arith.constant 0 : i32
    return %c0_i32, %c0_i32_0 : i32, i32
  }
  func.func @transform_9(%arg0: i32, %arg1: i32) -> (i32, i32, i32, i32) {
    %c0_i32 = arith.constant 0 : i32
    %c0_i32_0 = arith.constant 0 : i32
    %c0_i32_1 = arith.constant 0 : i32
    return %arg0, %arg1, %c0_i32, %c0_i32_0 : i32, i32, i32, i32
  }
}

module attributes {stable_mosaic.version = 11 : i64} {
  func.func @_mlp_kernel(%arg0: i32, %arg1: i32, %arg2: memref<1x4x8x128xf32, #tpu.memory_space<vmem>>, %arg3: memref<1x1x8x128xf32, #tpu.memory_space<vmem>>, %arg4: memref<1x1x8x128xf32, #tpu.memory_space<vmem>>, %arg5: memref<128x128xf32, #tpu.memory_space<vmem>>, %arg6: memref<1x128xf32, #tpu.memory_space<vmem>>, %arg7: memref<9x128xf32, #tpu.memory_space<vmem>>, %arg8: memref<1x128xf32, #tpu.memory_space<vmem>>, %arg9: memref<128x128xf32, #tpu.memory_space<vmem>>, %arg10: memref<1x128xf32, #tpu.memory_space<vmem>>, %arg11: memref<1x4x8x128xf32, #tpu.memory_space<vmem>>) attributes {dimension_semantics = [#tpu.dimension_semantics<parallel>, #tpu.dimension_semantics<parallel>], iteration_bounds = array<i64: 2, 2>, scalar_prefetch = 0 : i64, scratch_operands = 0 : i64, tpu.core_type = #tpu.core_type<tc>, window_params = [{transform_indices = @transform_0, window_bounds = array<i64: 1, 4, 8, 128>}, {transform_indices = @transform_1, window_bounds = array<i64: 1, 1, 8, 128>}, {transform_indices = @transform_2, window_bounds = array<i64: 1, 1, 8, 128>}, {pipeline_mode = #tpu.pipeline_mode<synchronous>, transform_indices = @transform_3, window_bounds = array<i64: 128, 128>}, {pipeline_mode = #tpu.pipeline_mode<synchronous>, transform_indices = @transform_4, window_bounds = array<i64: 1, 128>}, {pipeline_mode = #tpu.pipeline_mode<synchronous>, transform_indices = @transform_5, window_bounds = array<i64: 9, 128>}, {pipeline_mode = #tpu.pipeline_mode<synchronous>, transform_indices = @transform_6, window_bounds = array<i64: 1, 128>}, {pipeline_mode = #tpu.pipeline_mode<synchronous>, transform_indices = @transform_7, window_bounds = array<i64: 128, 128>}, {pipeline_mode = #tpu.pipeline_mode<synchronous>, transform_indices = @transform_8, window_bounds = array<i64: 1, 128>}, {transform_indices = @transform_9, window_bounds = array<i64: 1, 4, 8, 128>}]} {
    %c0 = arith.constant 0 : index
    %c0_0 = arith.constant 0 : index
    %0 = vector.load %arg5[%c0, %c0_0] : memref<128x128xf32, #tpu.memory_space<vmem>>, vector<128x128xf32>
    %c0_1 = arith.constant 0 : index
    %c0_2 = arith.constant 0 : index
    %1 = vector.load %arg6[%c0_1, %c0_2] : memref<1x128xf32, #tpu.memory_space<vmem>>, vector<1x128xf32>
    %c0_3 = arith.constant 0 : index
    %c0_4 = arith.constant 0 : index
    %2 = vector.load %arg7[%c0_3, %c0_4] : memref<9x128xf32, #tpu.memory_space<vmem>>, vector<9x128xf32>
    %c0_5 = arith.constant 0 : index
    %c0_6 = arith.constant 0 : index
    %3 = vector.load %arg8[%c0_5, %c0_6] : memref<1x128xf32, #tpu.memory_space<vmem>>, vector<1x128xf32>
    %c0_7 = arith.constant 0 : index
    %c0_8 = arith.constant 0 : index
    %4 = vector.load %arg9[%c0_7, %c0_8] : memref<128x128xf32, #tpu.memory_space<vmem>>, vector<128x128xf32>
    %c0_9 = arith.constant 0 : index
    %c0_10 = arith.constant 0 : index
    %5 = vector.load %arg10[%c0_9, %c0_10] : memref<1x128xf32, #tpu.memory_space<vmem>>, vector<1x128xf32>
    %c0_11 = arith.constant 0 : index
    %c0_12 = arith.constant 0 : index
    %c0_13 = arith.constant 0 : index
    %c0_14 = arith.constant 0 : index
    %6 = vector.load %arg3[%c0_11, %c0_12, %c0_13, %c0_14] : memref<1x1x8x128xf32, #tpu.memory_space<vmem>>, vector<1x1x8x128xf32>
    %7 = vector.shape_cast %6 : vector<1x1x8x128xf32> to vector<8x128xf32>
    %c0_15 = arith.constant 0 : index
    %c0_16 = arith.constant 0 : index
    %c0_17 = arith.constant 0 : index
    %c0_18 = arith.constant 0 : index
    %8 = vector.load %arg2[%c0_15, %c0_16, %c0_17, %c0_18] : memref<1x4x8x128xf32, #tpu.memory_space<vmem>>, vector<1x4x8x128xf32>
    %9 = vector.shape_cast %8 : vector<1x4x8x128xf32> to vector<4x8x128xf32>
    %10 = vector.shape_cast %9 : vector<4x8x128xf32> to vector<32x128xf32>
    %c0_19 = arith.constant 0 : index
    %c0_20 = arith.constant 0 : index
    %c0_21 = arith.constant 0 : index
    %c0_22 = arith.constant 0 : index
    %11 = vector.load %arg4[%c0_19, %c0_20, %c0_21, %c0_22] : memref<1x1x8x128xf32, #tpu.memory_space<vmem>>, vector<1x1x8x128xf32>
    %12 = vector.shape_cast %11 : vector<1x1x8x128xf32> to vector<8x128xf32>
    %13 = tpu.concatenate %7, %10, %12 in 0 : vector<8x128xf32>, vector<32x128xf32>, vector<8x128xf32> -> vector<48x128xf32>
    %cst = arith.constant dense<0.000000e+00> : vector<48x128xf32>
    %14 = tpu.matmul %13, %0, %cst {dimension_numbers = #tpu.dot_dimension_numbers<[1], [0], [0], [1], [0, 0, 1, 1], [], []>} : vector<48x128xf32>, vector<128x128xf32>, vector<48x128xf32> -> vector<48x128xf32>
    %15 = vector.broadcast %1 : vector<1x128xf32> to vector<48x128xf32>
    %16 = arith.addf %14, %15 : vector<48x128xf32>
    %c0_i32 = arith.constant 0 : i32
    %17 = arith.cmpi sgt, %arg1, %c0_i32 : i32
    %18 = arith.extui %17 : i1 to i32
    %19 = arith.sitofp %18 : i32 to f32
    %c1_i32 = arith.constant 1 : i32
    %20 = arith.cmpi slt, %arg1, %c1_i32 : i32
    %21 = arith.extui %20 : i1 to i32
    %22 = arith.sitofp %21 : i32 to f32
    %23 = tpu.iota {dimensions = array<i32: 0>} : vector<48x1xi32>
    %c8_i32 = arith.constant 8 : i32
    %24 = vector.broadcast %c8_i32 : i32 to vector<48x1xi32>
    %25 = arith.cmpi slt, %23, %24 : vector<48x1xi32>
    %c40_i32 = arith.constant 40 : i32
    %26 = vector.broadcast %c40_i32 : i32 to vector<48x1xi32>
    %27 = arith.cmpi sge, %23, %26 : vector<48x1xi32>
    %cst_23 = arith.constant 1.000000e+00 : f32
    %28 = vector.broadcast %22 : f32 to vector<48x1xf32>
    %29 = vector.broadcast %cst_23 : f32 to vector<48x1xf32>
    %30 = arith.select %27, %28, %29 : vector<48x1xi1>, vector<48x1xf32>
    %31 = vector.broadcast %19 : f32 to vector<48x1xf32>
    %32 = arith.select %25, %31, %30 : vector<48x1xi1>, vector<48x1xf32>
    %33 = vector.broadcast %32 : vector<48x1xf32> to vector<48x128xf32>
    %34 = arith.mulf %16, %33 : vector<48x128xf32>
    %c1_i32_24 = arith.constant 1 : i32
    %35 = tpu.dynamic_rotate %34 by %c1_i32_24 dim 0 : vector<48x128xf32>, i32 -> vector<48x128xf32>
    %c47_i32 = arith.constant 47 : i32
    %36 = tpu.dynamic_rotate %34 by %c47_i32 dim 0 : vector<48x128xf32>, i32 -> vector<48x128xf32>
    %37 = tpu.iota {dimensions = array<i32: 0>} : vector<32x1xi32>
    %c8_i32_25 = arith.constant 8 : i32
    %c0_i32_26 = arith.constant 0 : i32
    %38 = arith.cmpi eq, %c8_i32_25, %c0_i32_26 : i32
    %c1_i32_27 = arith.constant 1 : i32
    %39 = arith.select %38, %c1_i32_27, %c8_i32_25 : i32
    %40 = vector.broadcast %39 : i32 to vector<32x1xi32>
    %41 = arith.remsi %37, %40 : vector<32x1xi32>
    %c0_i32_28 = arith.constant 0 : i32
    %42 = vector.broadcast %c0_i32_28 : i32 to vector<32x1xi32>
    %43 = arith.cmpi ne, %41, %42 : vector<32x1xi32>
    %c0_i32_29 = arith.constant 0 : i32
    %44 = vector.broadcast %c0_i32_29 : i32 to vector<32x1xi32>
    %45 = arith.cmpi slt, %41, %44 : vector<32x1xi32>
    %c0_i32_30 = arith.constant 0 : i32
    %46 = arith.cmpi slt, %39, %c0_i32_30 : i32
    %47 = vector.broadcast %46 : i1 to vector<32x1xi1>
    %48 = vector.broadcast %47 : vector<32x1xi1> to vector<32x1xi1>
    %49 = arith.xori %45, %48 : vector<32x1xi1>
    %50 = arith.andi %49, %43 : vector<32x1xi1>
    %51 = vector.broadcast %39 : i32 to vector<32x1xi32>
    %52 = arith.addi %41, %51 : vector<32x1xi32>
    %53 = arith.select %50, %52, %41 : vector<32x1xi1>, vector<32x1xi32>
    %c0_i32_31 = arith.constant 0 : i32
    %54 = vector.broadcast %c0_i32_31 : i32 to vector<32x1xi32>
    %55 = arith.cmpi sgt, %53, %54 : vector<32x1xi32>
    %56 = arith.extui %55 : vector<32x1xi1> to vector<32x1xi32>
    %57 = arith.sitofp %56 : vector<32x1xi32> to vector<32x1xf32>
    %c7_i32 = arith.constant 7 : i32
    %58 = vector.broadcast %c7_i32 : i32 to vector<32x1xi32>
    %59 = arith.cmpi slt, %53, %58 : vector<32x1xi32>
    %60 = arith.extui %59 : vector<32x1xi1> to vector<32x1xi32>
    %61 = arith.sitofp %60 : vector<32x1xi32> to vector<32x1xf32>
    %62 = vector.extract_strided_slice %34 {offsets = [0, 0], sizes = [32, 128], strides = [1, 1]} : vector<48x128xf32> to vector<32x128xf32>
    %63 = vector.extract_strided_slice %2 {offsets = [1, 0], sizes = [1, 128], strides = [1, 1]} : vector<9x128xf32> to vector<1x128xf32>
    %64 = vector.shape_cast %63 : vector<1x128xf32> to vector<128xf32>
    %65 = vector.shape_cast %64 : vector<128xf32> to vector<1x128xf32>
    %66 = vector.broadcast %65 : vector<1x128xf32> to vector<32x128xf32>
    %67 = arith.mulf %62, %66 : vector<32x128xf32>
    %68 = vector.extract_strided_slice %34 {offsets = [8, 0], sizes = [32, 128], strides = [1, 1]} : vector<48x128xf32> to vector<32x128xf32>
    %69 = vector.extract_strided_slice %2 {offsets = [4, 0], sizes = [1, 128], strides = [1, 1]} : vector<9x128xf32> to vector<1x128xf32>
    %70 = vector.shape_cast %69 : vector<1x128xf32> to vector<128xf32>
    %71 = vector.shape_cast %70 : vector<128xf32> to vector<1x128xf32>
    %72 = vector.broadcast %71 : vector<1x128xf32> to vector<32x128xf32>
    %73 = arith.mulf %68, %72 : vector<32x128xf32>
    %74 = arith.addf %67, %73 : vector<32x128xf32>
    %75 = vector.extract_strided_slice %34 {offsets = [16, 0], sizes = [32, 128], strides = [1, 1]} : vector<48x128xf32> to vector<32x128xf32>
    %76 = vector.extract_strided_slice %2 {offsets = [7, 0], sizes = [1, 128], strides = [1, 1]} : vector<9x128xf32> to vector<1x128xf32>
    %77 = vector.shape_cast %76 : vector<1x128xf32> to vector<128xf32>
    %78 = vector.shape_cast %77 : vector<128xf32> to vector<1x128xf32>
    %79 = vector.broadcast %78 : vector<1x128xf32> to vector<32x128xf32>
    %80 = arith.mulf %75, %79 : vector<32x128xf32>
    %81 = arith.addf %74, %80 : vector<32x128xf32>
    %82 = vector.extract_strided_slice %35 {offsets = [0, 0], sizes = [32, 128], strides = [1, 1]} : vector<48x128xf32> to vector<32x128xf32>
    %83 = vector.extract_strided_slice %2 {offsets = [0, 0], sizes = [1, 128], strides = [1, 1]} : vector<9x128xf32> to vector<1x128xf32>
    %84 = vector.shape_cast %83 : vector<1x128xf32> to vector<128xf32>
    %85 = vector.shape_cast %84 : vector<128xf32> to vector<1x128xf32>
    %86 = vector.broadcast %85 : vector<1x128xf32> to vector<32x128xf32>
    %87 = arith.mulf %82, %86 : vector<32x128xf32>
    %88 = vector.extract_strided_slice %35 {offsets = [8, 0], sizes = [32, 128], strides = [1, 1]} : vector<48x128xf32> to vector<32x128xf32>
    %89 = vector.extract_strided_slice %2 {offsets = [3, 0], sizes = [1, 128], strides = [1, 1]} : vector<9x128xf32> to vector<1x128xf32>
    %90 = vector.shape_cast %89 : vector<1x128xf32> to vector<128xf32>
    %91 = vector.shape_cast %90 : vector<128xf32> to vector<1x128xf32>
    %92 = vector.broadcast %91 : vector<1x128xf32> to vector<32x128xf32>
    %93 = arith.mulf %88, %92 : vector<32x128xf32>
    %94 = arith.addf %87, %93 : vector<32x128xf32>
    %95 = vector.extract_strided_slice %35 {offsets = [16, 0], sizes = [32, 128], strides = [1, 1]} : vector<48x128xf32> to vector<32x128xf32>
    %96 = vector.extract_strided_slice %2 {offsets = [6, 0], sizes = [1, 128], strides = [1, 1]} : vector<9x128xf32> to vector<1x128xf32>
    %97 = vector.shape_cast %96 : vector<1x128xf32> to vector<128xf32>
    %98 = vector.shape_cast %97 : vector<128xf32> to vector<1x128xf32>
    %99 = vector.broadcast %98 : vector<1x128xf32> to vector<32x128xf32>
    %100 = arith.mulf %95, %99 : vector<32x128xf32>
    %101 = arith.addf %94, %100 : vector<32x128xf32>
    %102 = vector.broadcast %57 : vector<32x1xf32> to vector<32x128xf32>
    %103 = arith.mulf %102, %101 : vector<32x128xf32>
    %104 = arith.addf %81, %103 : vector<32x128xf32>
    %105 = vector.extract_strided_slice %36 {offsets = [0, 0], sizes = [32, 128], strides = [1, 1]} : vector<48x128xf32> to vector<32x128xf32>
    %106 = vector.extract_strided_slice %2 {offsets = [2, 0], sizes = [1, 128], strides = [1, 1]} : vector<9x128xf32> to vector<1x128xf32>
    %107 = vector.shape_cast %106 : vector<1x128xf32> to vector<128xf32>
    %108 = vector.shape_cast %107 : vector<128xf32> to vector<1x128xf32>
    %109 = vector.broadcast %108 : vector<1x128xf32> to vector<32x128xf32>
    %110 = arith.mulf %105, %109 : vector<32x128xf32>
    %111 = vector.extract_strided_slice %36 {offsets = [8, 0], sizes = [32, 128], strides = [1, 1]} : vector<48x128xf32> to vector<32x128xf32>
    %112 = vector.extract_strided_slice %2 {offsets = [5, 0], sizes = [1, 128], strides = [1, 1]} : vector<9x128xf32> to vector<1x128xf32>
    %113 = vector.shape_cast %112 : vector<1x128xf32> to vector<128xf32>
    %114 = vector.shape_cast %113 : vector<128xf32> to vector<1x128xf32>
    %115 = vector.broadcast %114 : vector<1x128xf32> to vector<32x128xf32>
    %116 = arith.mulf %111, %115 : vector<32x128xf32>
    %117 = arith.addf %110, %116 : vector<32x128xf32>
    %118 = vector.extract_strided_slice %36 {offsets = [16, 0], sizes = [32, 128], strides = [1, 1]} : vector<48x128xf32> to vector<32x128xf32>
    %119 = vector.extract_strided_slice %2 {offsets = [8, 0], sizes = [1, 128], strides = [1, 1]} : vector<9x128xf32> to vector<1x128xf32>
    %120 = vector.shape_cast %119 : vector<1x128xf32> to vector<128xf32>
    %121 = vector.shape_cast %120 : vector<128xf32> to vector<1x128xf32>
    %122 = vector.broadcast %121 : vector<1x128xf32> to vector<32x128xf32>
    %123 = arith.mulf %118, %122 : vector<32x128xf32>
    %124 = arith.addf %117, %123 : vector<32x128xf32>
    %125 = vector.broadcast %61 : vector<32x1xf32> to vector<32x128xf32>
    %126 = arith.mulf %125, %124 : vector<32x128xf32>
    %127 = arith.addf %104, %126 : vector<32x128xf32>
    %128 = vector.broadcast %3 : vector<1x128xf32> to vector<32x128xf32>
    %129 = arith.addf %127, %128 : vector<32x128xf32>
    %cst_32 = arith.constant 5.000000e-01 : f32
    %130 = vector.broadcast %cst_32 : f32 to vector<32x128xf32>
    %131 = arith.mulf %130, %129 : vector<32x128xf32>
    %cst_33 = arith.constant 0.707106769 : f32
    %132 = vector.broadcast %cst_33 : f32 to vector<32x128xf32>
    %133 = arith.mulf %129, %132 : vector<32x128xf32>
    %134 = math.erf %133 : vector<32x128xf32>
    %cst_34 = arith.constant 1.000000e+00 : f32
    %135 = vector.broadcast %cst_34 : f32 to vector<32x128xf32>
    %136 = arith.addf %135, %134 : vector<32x128xf32>
    %137 = arith.mulf %131, %136 : vector<32x128xf32>
    %cst_35 = arith.constant dense<0.000000e+00> : vector<32x128xf32>
    %138 = tpu.matmul %137, %4, %cst_35 {dimension_numbers = #tpu.dot_dimension_numbers<[1], [0], [0], [1], [0, 0, 1, 1], [], []>} : vector<32x128xf32>, vector<128x128xf32>, vector<32x128xf32> -> vector<32x128xf32>
    %139 = vector.broadcast %5 : vector<1x128xf32> to vector<32x128xf32>
    %140 = arith.addf %138, %139 : vector<32x128xf32>
    %141 = vector.shape_cast %140 : vector<32x128xf32> to vector<4x8x128xf32>
    %c0_36 = arith.constant 0 : index
    %c0_37 = arith.constant 0 : index
    %c0_38 = arith.constant 0 : index
    %c0_39 = arith.constant 0 : index
    %142 = vector.load %arg11[%c0_36, %c0_37, %c0_38, %c0_39] : memref<1x4x8x128xf32, #tpu.memory_space<vmem>>, vector<1x4x8x128xf32>
    %143 = vector.shape_cast %142 : vector<1x4x8x128xf32> to vector<4x8x128xf32>
    %144 = vector.shape_cast %141 : vector<4x8x128xf32> to vector<1x4x8x128xf32>
    tpu.vector_store %arg11[%c0_36, %c0_37, %c0_38, %c0_39], %144 {strides = array<i32>} : memref<1x4x8x128xf32, #tpu.memory_space<vmem>>, vector<1x4x8x128xf32>,
    return
  }
  func.func @transform_0(%arg0: i32, %arg1: i32) -> (i32, i32, i32, i32) {
    %c0_i32 = arith.constant 0 : i32
    %c0_i32_0 = arith.constant 0 : i32
    %c0_i32_1 = arith.constant 0 : i32
    return %arg0, %arg1, %c0_i32, %c0_i32_0 : i32, i32, i32, i32
  }
  func.func @transform_1(%arg0: i32, %arg1: i32) -> (i32, i32, i32, i32) {
    %c4_i32 = arith.constant 4 : i32
    %0 = arith.muli %arg1, %c4_i32 : i32
    %c1_i32 = arith.constant 1 : i32
    %1 = arith.subi %0, %c1_i32 : i32
    %c0_i32 = arith.constant 0 : i32
    %2 = arith.maxsi %1, %c0_i32 : i32
    %c0_i32_0 = arith.constant 0 : i32
    %c0_i32_1 = arith.constant 0 : i32
    %c0_i32_2 = arith.constant 0 : i32
    return %arg0, %2, %c0_i32_0, %c0_i32_1 : i32, i32, i32, i32
  }
  func.func @transform_2(%arg0: i32, %arg1: i32) -> (i32, i32, i32, i32) {
    %c1_i32 = arith.constant 1 : i32
    %0 = arith.addi %arg1, %c1_i32 : i32
    %c4_i32 = arith.constant 4 : i32
    %1 = arith.muli %0, %c4_i32 : i32
    %c7_i32 = arith.constant 7 : i32
    %2 = arith.minsi %1, %c7_i32 : i32
    %c0_i32 = arith.constant 0 : i32
    %c0_i32_0 = arith.constant 0 : i32
    %c0_i32_1 = arith.constant 0 : i32
    return %arg0, %2, %c0_i32, %c0_i32_0 : i32, i32, i32, i32
  }
  func.func @transform_3(%arg0: i32, %arg1: i32) -> (i32, i32) {
    %c0_i32 = arith.constant 0 : i32
    %c0_i32_0 = arith.constant 0 : i32
    %c0_i32_1 = arith.constant 0 : i32
    return %c0_i32, %c0_i32_0 : i32, i32
  }
  func.func @transform_4(%arg0: i32, %arg1: i32) -> (i32, i32) {
    %c0_i32 = arith.constant 0 : i32
    %c0_i32_0 = arith.constant 0 : i32
    %c0_i32_1 = arith.constant 0 : i32
    return %c0_i32, %c0_i32_0 : i32, i32
  }
  func.func @transform_5(%arg0: i32, %arg1: i32) -> (i32, i32) {
    %c0_i32 = arith.constant 0 : i32
    %c0_i32_0 = arith.constant 0 : i32
    %c0_i32_1 = arith.constant 0 : i32
    return %c0_i32, %c0_i32_0 : i32, i32
  }
  func.func @transform_6(%arg0: i32, %arg1: i32) -> (i32, i32) {
    %c0_i32 = arith.constant 0 : i32
    %c0_i32_0 = arith.constant 0 : i32
    %c0_i32_1 = arith.constant 0 : i32
    return %c0_i32, %c0_i32_0 : i32, i32
  }
  func.func @transform_7(%arg0: i32, %arg1: i32) -> (i32, i32) {
    %c0_i32 = arith.constant 0 : i32
    %c0_i32_0 = arith.constant 0 : i32
    %c0_i32_1 = arith.constant 0 : i32
    return %c0_i32, %c0_i32_0 : i32, i32
  }
  func.func @transform_8(%arg0: i32, %arg1: i32) -> (i32, i32) {
    %c0_i32 = arith.constant 0 : i32
    %c0_i32_0 = arith.constant 0 : i32
    %c0_i32_1 = arith.constant 0 : i32
    return %c0_i32, %c0_i32_0 : i32, i32
  }
  func.func @transform_9(%arg0: i32, %arg1: i32) -> (i32, i32, i32, i32) {
    %c0_i32 = arith.constant 0 : i32
    %c0_i32_0 = arith.constant 0 : i32
    %c0_i32_1 = arith.constant 0 : i32
    return %arg0, %arg1, %c0_i32, %c0_i32_0 : i32, i32, i32, i32
  }
}

</mosaic_0001>

<bundles_post_ra>
// kernel: tpu_custom_call.1
= control target key start
LH: loop header
LB: loop body
LE: loop exit
PB: predicated region body
PF: predicated region fallthrough
CT: control target
= control target key end

     0   :  { %s2665_s0 = inlined_call_operand.hbm [shape: f32[2,8,8,128], index: 0, kind: input, shape index: {}]   ;;  %s2666_s1 = inlined_call_operand.hbm [shape: f32[2,8,8,128], index: 1, kind: input, shape index: {}]   ;;  %s2667_s2 = inlined_call_operand.hbm [shape: f32[2,8,8,128], index: 2, kind: input, shape index: {}]   ;;  %s2668_s3 = inlined_call_operand.hbm [shape: f32[128,128], index: 3, kind: input, shape index: {}]   ;;  %s2669_s4 = inlined_call_operand.vmem [shape: f32[1,128], index: 4, kind: input, shape index: {}]   ;;  %s2670_s5 = inlined_call_operand.hbm [shape: f32[9,128], index: 5, kind: input, shape index: {}]   ;;  %s2671_s6 = inlined_call_operand.vmem [shape: f32[1,128], index: 6, kind: input, shape index: {}]   ;;  %s2672_s7 = inlined_call_operand.hbm [shape: f32[128,128], index: 7, kind: input, shape index: {}]   ;;  %s2673_s8 = inlined_call_operand.vmem [shape: f32[1,128], index: 8, kind: input, shape index: {}]   ;;  %s2674_s9 = inlined_call_operand.hbm [shape: f32[2,8,8,128], index: 9, kind: output, shape index: {}]  }
   0x1   :  { %2695 = sst [smem:[#allocation36_spill]] %s2665_s0 }
   0x2   :  { %2696 = sst [smem:[#allocation37_spill]] %s2666_s1 }
   0x3   :  { %2697 = sst [smem:[#allocation38_spill]] %s2667_s2 }
   0x4   :  { %2698 = sst [smem:[#allocation39_spill]] %s2668_s3 }
   0x5   :  { %2699 = sst [smem:[#allocation40_spill]] %s2669_s4 }
   0x6   :  { %2700 = sst [smem:[#allocation41_spill]] %s2670_s5 }
   0x7   :  { %2701 = sst [smem:[#allocation42_spill]] %s2671_s6 }
   0x8   :  { %2702 = sst [smem:[#allocation43_spill]] %s2672_s7 }
   0x9   :  { %2703 = sst [smem:[#allocation44_spill]] %s2673_s8 }
   0xa   :  { %2704 = sst [smem:[#allocation45_spill]] %s2674_s9 }
   0xb   :  { %14 = vsyncpa [#allocation3], 0 }
   0xc   :  { %16 = vsyncpa [#allocation3 + $0x1], 0 }
   0xd   :  { %17 = vsyncpa [#allocation6], 0 }
   0xe   :  { %19 = vsyncpa [#allocation6 + $0x1], 0 }
   0xf   :  { %20 = vsyncpa [#allocation9], 0 }
  0x10   :  { %21 = vsyncpa [#allocation12], 0 }
  0x11   :  { %22 = vsyncpa [#allocation4], 0 }
  0x12   :  { %24 = vsyncpa [#allocation4 + $0x1], 0  ;;  %s1926_s30 = smov 0   ;;  %s1928_s10 = smov 0  }
  0x13   :  { %s1930_s11 = smov 0   ;;  %s1932_s12 = smov 0  }
  0x14   :  { %s1934_s13 = smov 0   ;;  %s1936_s14 = smov 0  }
  0x15   :  { %s1938_s15 = smov 0   ;;  %s1940_s16 = smov 0  }
  0x16   :  { %s1942_s17 = smov 0   ;;  %s1944_s18 = smov 0  }
  0x17   :  { %s1946_s19 = smov 0   ;;  %s1948_s20 = smov 0  }
  0x18   :  { %s1950_s21 = smov 0   ;;  %s1952_s22 = smov 0  }
  0x19 LB: > { %2705 = sst [smem:[#allocation20_spill]] %s1814_s30  ;;  %s1997_s23 = sadd.s32 4294967295, %s1866_s22   ;;  %s1866_s22 = sphi %s1952_s22, %s30_s22   ;;  %s1862_s21 = sphi %s1950_s21, %s2781_s21   ;;  %s1858_s20 = sphi %s1948_s20, %s2788_s20   ;;  %s1854_s19 = sphi %s1946_s19, %s2779_s19   ;;  %s1850_s18 = sphi %s1944_s18, %s2778_s18   ;;  %s1846_s17 = sphi %s1942_s17, %s2777_s17   ;;  %s1842_s16 = sphi %s1940_s16, %s2787_s16   ;;  %s1838_s15 = sphi %s1938_s15, %s2786_s15   ;;  %s1834_s14 = sphi %s1936_s14, %s2785_s14   ;;  %s1830_s13 = sphi %s1934_s13, %s2784_s13   ;;  %s1826_s12 = sphi %s1932_s12, %s2774_s12   ;;  %s1822_s11 = sphi %s1930_s11, %s2783_s11   ;;  %s1818_s10 = sphi %s1928_s10, %s2782_s10   ;;  %s1814_s30 = sphi %s1926_s30, %s2773_s30  }
  0x1a   : > { %2706 = sst [smem:[#allocation21_spill]] %s1818_s10  ;;  %p1258_p0 = scmp.ge.s32.totalorder %s1866_s22, 1 }
  0x1b   : > { %2707 = sst [smem:[#allocation22_spill]] %s1830_s13  ;;  %p65_p1 = scmp.eq.s32.totalorder %s1997_s23, 0 }
  0x1c   : > { %2708 = sst [smem:[#allocation23_spill]] %s1846_s17  ;;  %p301_p2 = scmp.lt.s32.totalorder %s1866_s22, 5 }
  0x1d   : > { %2709 = sst [smem:[#allocation24_spill]] %s1850_s18  ;;  %s1868_s28 = smov [#allocation8]  }
  0x1e   : > { %2710 = sst [smem:[#allocation25_spill]] %s1854_s19  ;;  %p2005_p3 = pnand %p1258_p0, %p301_p2 }
  0x1f   : > { %2711 = sst [smem:[#allocation26_spill]] %s1858_s20  ;;  %s314_s29 = sshll.u32 %s1868_s28, 4  ;;  %s315_s29 = int_to_ptr.vmem [resolvable:$true] %s314_s29 }
  0x20   : > { %2712 = sst [smem:[#allocation27_spill]] %s1862_s21  ;;  %p1360_p4 = pneg %p2005_p3 }
  0x21   : > { %s2713_s3 = sld [smem:[#allocation39_spill]]  ;;  %s2676_s24 = smov 128  }
  0x22   : > { %s2714_s27 = scalar_select %p2005_p3, 1, 0 }
  0x23   : > { %p2013_p5 = pnand %p1360_p4, %p65_p1  ;;  %s2678_s25 = smov 8  }
  0x24   : > { %2715 = sst [smem:[#allocation28_spill]] %s2714_s27  ;;  %s42_s8 = sadd.s32 1, %s1862_s21 }
  0x25   : > { %p59_p7 = scmp.eq.s32.totalorder %s1866_s22, 0  ;;  %s2026_s28 = sshll.u32 %s1858_s20, 2 }
  0x26   : > { %p94_p12 = scmp.ne.s32.totalorder %s1834_s14, %s1830_s13  ;;  %p100_p0 = scmp.ne.s32.totalorder %s1830_s13, %s1826_s12 }
  0x27   : > { %s312_s26 = sshll.u32 %s2713_s3, 4  ;;  %s39_s3 = sadd.s32 1, %s1858_s20  ;;  %s313_s26 = int_to_ptr.hbm [resolvable:$true] %s312_s26 }
  0x28   : > { %1363 = dma.hbm_to_vmem [thread:$0]  (!%p2013_p5), %s313_s26, 2048, %s315_s29, [#allocation9], %s2676_s24, %s2676_s24, %s2678_s25  }
  0x29   : > { %p40_p6 = scmp.ge.s32.totalorder %s39_s3, 2  ;;  %s1253_s26 = sadd.s32 4294967295, %s2026_s28 }
  0x2a   : > { %p76_p9 = scmp.gt.s32.totalorder %s1253_s26, 0  ;;  %s87_s24 = sadd.s32 1, %s1834_s14 }
  0x2b   : > { %s2790_s3 = smov (%p40_p6, %s39_s3), 0  ;;  %s2792_s8 = smov (!%p40_p6, %s42_s8), %s1862_s21 }
  0x2c   : > { %2717 = sst [smem:[#allocation29_spill]] %s2790_s3  ;;  %s47_s19 = ssub.s32 %s1858_s20, %s2790_s3 }
  0x2d   : > { %p44_p8 = scmp.ge.s32.totalorder %s2792_s8, 2  ;;  %s1254_s29 = sshll.u32 %s2790_s3, 2 }
  0x2e   : > { %s2796_s26 = smov (!%p76_p9, %s1253_s26), 0  ;;  %s1255_s6 = sadd.s32 4294967295, %s1254_s29 }
  0x2f   : > { %s2794_s8 = smov (%p44_p8, %s2792_s8), 0  ;;  %p80_p10 = scmp.gt.s32.totalorder %s1255_s6, 0 }
  0x30   : > { %2718 = sst [smem:[#allocation30_spill]] %s2794_s8  ;;  %s2040_s25 = ssub.s32 %s1862_s21, %s2794_s8 }
  0x31   : > { %2719 = sst [smem:[#allocation31_spill]] %s2040_s25  ;;  %s2043_s20 = sor.u32 %s47_s19, %s2040_s25 }
  0x32   : > { %p49_p11 = scmp.eq.s32.totalorder %s2043_s20, 0  ;;  %s2798_s6 = smov (!%p80_p10, %s1255_s6), 0 }
  0x33   : > { %p2050_p13 = por %p94_p12, %p59_p7  ;;  %s83_s8 = ssub.s32 %s2796_s26, %s2798_s6 }
  0x34   : > { %s2056_s4 = sadd.s32 4, %s1254_s29  ;;  %s84_s19 = sor.u32 %s83_s8, %s2040_s25 }
  0x35   : > { %2721 = sst [smem:[#allocation32_spill]] %s2056_s4  ;;  %p2061_p2 = por %p100_p0, %p65_p1 }
  0x36   : > { %p85_p4 = scmp.eq.s32.totalorder %s84_s19, 0  ;;  %p116_p6 = scmp.lt.s32.totalorder %s2056_s4, 7 }
  0x37   : > { %s2722_s18 = scalar_select %p2061_p2, 1, 0 }
  0x38   : > { %p2694_p8 = scmp.lt.s32.totalorder %s1866_s22, 4  ;;  %s2068_s27 = sshll.u32 %s1862_s21, 3 }
  0x39   : > { %2723 = sst [smem:[#allocation33_spill]] %s2722_s18  ;;  %s389_s29 = sand.u32 1, %s1866_s22  }
  0x3a   : > { %s2071_s12 = scalar_select %p85_p4, %s1834_s14, %s87_s24  }
  0x3b   : > { %s391_s13 = sand.u32 1, %s1834_s14   ;;  %s401_s2 = sadd.s32 %s2068_s27, %s2796_s26 }
  0x3c   : > { %2724 = sst [smem:[#allocation34_spill]] %s2071_s12  ;;  %s1267_s8 = sshll.u32 %s391_s13, 3 }
  0x3d   : > { %s1271_s25 = sshll.u32 %s401_s2, 3  ;;  %s2725_s1 = sld [smem:[#allocation37_spill]] }
  0x3e   : > { %s393_s18 = scalar_lea.vmem [#allocation5], %s1267_s8  ;;  %p1374_p9 = pnand %p2694_p8, %p2050_p13 }
  0x3f   : > { %s407_s10 = sshll.u32 %s393_s18, 4  ;;  %s2726_s5 = sld [smem:[#allocation41_spill]]  ;;  %s408_s10 = int_to_ptr.vmem [resolvable:$true] %s407_s10 }
  0x40   : > { %s2088_s0 = scalar_lea.sflag [#allocation6], %s389_s29  ;;  %s1871_s3 = smov [#allocation10]  }
  0x41   : > { %s331_s30 = sshll.u32 %s1871_s3, 4  ;;  %s2727_s7 = sld [smem:[#allocation43_spill]]  ;;  %s332_s30 = int_to_ptr.vmem [resolvable:$true] %s331_s30 }
  0x42   : > { %s2728_s26 = smov 8   ;;  %s2729_s6 = smov 128  }
  0x43   : > { %s403_s19 = scalar_lea.hbm %s2725_s1, %s1271_s25  ;;  %s1872_s29 = smov [#allocation11]  }
  0x44   : > { %s405_s4 = sshll.u32 %s403_s19, 4  ;;  %s51_s8 = sadd.s32 1, %s1846_s17  ;;  %s406_s4 = int_to_ptr.hbm [resolvable:$true] %s405_s4 }
  0x45   : > { %s329_s2 = sshll.u32 %s2726_s5, 4  ;;  %p58_p10 = scmp.ne.s32.totalorder %s1846_s17, %s1842_s16  ;;  %s330_s2 = int_to_ptr.hbm [resolvable:$true] %s329_s2 }
  0x46   : > { %1376 = dma.hbm_to_vmem [thread:$0]  (!%p1374_p9), %s406_s4, 128, %s408_s10, %s2088_s0  }
  0x47   : > { %s346_s25 = sshll.u32 %s2727_s7, 4  ;;  %s348_s4 = sshll.u32 %s1872_s29, 4  ;;  %s347_s25 = int_to_ptr.hbm [resolvable:$true] %s346_s25  ;;  %s349_s4 = int_to_ptr.vmem [resolvable:$true] %s348_s4 }
  0x48   : > { %1366 = dma.hbm_to_vmem [thread:$0]  (!%p2013_p5), %s330_s2, 256, %s332_s30, [#allocation9], %s2729_s6, %s2729_s6, %s2728_s26  }
  0x49   : > { %1369 = dma.hbm_to_vmem [thread:$0]  (!%p2013_p5), %s347_s25, 2048, %s349_s4, [#allocation12], %s2729_s6, %s2729_s6, %s2728_s26  }
  0x4a   : > { %s1251_s10 = sadd.s32 4294967294, %s1866_s22   ;;  %p2115_p12 = por %p59_p7, %p58_p10 }
  0x4b   : > { %s2111_s19 = scalar_select %p49_p11, %s1846_s17, %s51_s8  }
  0x4c   : > { %p64_p13 = scmp.ne.s32.totalorder %s1842_s16, %s1838_s15  ;;  %p288_p0 = scmp.eq.s32.totalorder %s1997_s23, 3 }
  0x4d   : > { %2730 = sst [smem:[#allocation35_spill]] %s2111_s19  ;;  %p294_p4 = scmp.eq.s32.totalorder %s1251_s10, 3 }
  0x4e   : > { %p2124_p9 = por %p65_p1, %p64_p13  ;;  %s365_s2 = sand.u32 1, %s1846_s17  }
  0x4f   : > { %p2129_p5 = por %p288_p0, %p58_p10  ;;  %s2734_s3 = sld [smem:[#allocation32_spill]] }
  0x50   : > { %p2133_p11 = por %p294_p4, %p64_p13  ;;  %s1263_s13 = sshll.u32 %s365_s2, 5 }
  0x51   : > { %s2736_s18 = sadd.s32 %s2068_s27, %s2026_s28  ;;  %s2737_s25 = sld [smem:[#allocation21_spill]] }
  0x52   : > { %s1266_s29 = sshll.u32 %s2736_s18, 3  ;;  %s2738_s8 = sld [smem:[#allocation36_spill]] }
  0x53   : > { %s2739_s1 = sld [smem:[#allocation20_spill]]  ;;  %s369_s7 = scalar_lea.vmem [#allocation2], %s1263_s13 }
  0x54   : > { %s379_s21 = sshll.u32 %s369_s7, 4  ;;  %s2740_s19 = sld [smem:[#allocation31_spill]]  ;;  %s380_s21 = int_to_ptr.vmem [resolvable:$true] %s379_s21 }
  0x55   : > { %p1371_p10 = pnand %p2694_p8, %p2115_p12  ;;  %s366_s12 = scalar_lea.sflag [#allocation3], %s365_s2 }
  0x56   : > { %s1303_s18 = sadd.s32 4, %s2026_s28  ;;  %s123_s13 = sadd.s32 1, %s1822_s11 }
  0x57   : > { %p112_p13 = scmp.lt.s32.totalorder %s1303_s18, 7  ;;  %s2800_s3 = smov (!%p116_p6, %s2734_s3), 7 }
  0x58   : > { %s376_s5 = scalar_lea.hbm %s2738_s8, %s1266_s29  ;;  %p130_p0 = scmp.ne.s32.totalorder %s1822_s11, %s2737_s25 }
  0x59   : > { %s377_s17 = sshll.u32 %s376_s5, 4  ;;  %s2802_s18 = smov (!%p112_p13, %s1303_s18), 7  ;;  %s378_s17 = int_to_ptr.hbm [resolvable:$true] %s377_s17 }
  0x5a   : > { %1373 = dma.hbm_to_vmem [thread:$0]  (!%p1371_p10), %s378_s17, 512, %s380_s21, %s366_s12, %s2729_s6, %s2729_s6, %s2728_s26  }
  0x5b   : > { %p136_p4 = scmp.ne.s32.totalorder %s2737_s25, %s2739_s1  ;;  %s119_s5 = ssub.s32 %s2802_s18, %s2800_s3 }
  0x5c   : > { %s416_s7 = sand.u32 1, %s1822_s11   ;;  %s120_s24 = sor.u32 %s119_s5, %s2740_s19 }
  0x5d   : > { %p2163_p12 = por %p130_p0, %p59_p7  ;;  %p121_p10 = scmp.eq.s32.totalorder %s120_s24, 0 }
  0x5e   : > { %p2169_p8 = por %p136_p4, %p65_p1  ;;  %s1272_s21 = sshll.u32 %s416_s7, 3 }
  0x5f   : > { %s426_s28 = sadd.s32 %s2068_s27, %s2802_s18  ;;  %s2743_s19 = sld [smem:[#allocation38_spill]] }
  0x60   : > { %s2175_s1 = scalar_select %p121_p10, %s1822_s11, %s123_s13  }
  0x61   : > { %s1275_s12 = sshll.u32 %s426_s28, 3  ;;  %s418_s25 = scalar_lea.vmem [#allocation7], %s1272_s21 }
  0x62   : > { %s432_s29 = sshll.u32 %s418_s25, 4  ;;  %p2744_p7 = scmp.lt.s32.totalorder %s1866_s22, 4  ;;  %s433_s29 = int_to_ptr.vmem [resolvable:$true] %s432_s29 }
  0x63   : > { %441 = sbr.rel (%p2005_p3) target bundleno = 532 (0x214), region = 56  ;;  %s2188_s27 = sand.u32 (!%p2005_p3), 1, %s1842_s16  }
  0x64   : > { %p1377_p6 = pnand %p2744_p7, %p2163_p12  ;;  %s1277_s8 = sshll.u32 (!%p2005_p3), %s2188_s27, 5 }
  0x65   : > { %s428_s3 = scalar_lea.hbm %s2743_s19, %s1275_s12  ;;  %s444_s18 = scalar_lea.sflag (!%p2005_p3), [#allocation3], %s2188_s27 }
  0x66   : > { %s430_s4 = sshll.u32 %s428_s3, 4  ;;  %s2194_s13 = scalar_lea.vmem (!%p2005_p3), [#allocation2], %s1277_s8  ;;  %s431_s4 = int_to_ptr.hbm [resolvable:$true] %s430_s4 }
  0x67   : > { %1379 = dma.hbm_to_vmem [thread:$0]  (!%p1377_p6), %s431_s4, 128, %s433_s29, %s2088_s0  }
  0x68   : > { %1789 = dma.done.wait (%p2124_p9), %s444_s18, 512  }
  0x69   : > { %1791 = vsyncadd (%p2124_p9), %s444_s18, 4294966784  ;;  %s2746_s0 = sld [smem:[#allocation22_spill]]  ;;  %s453_s7 = sand.u32 1, %s1997_s23  }
  0x6a   : > { %s454_s21 = scalar_lea.sflag [#allocation6], %s453_s7 }
  0x6f   : > { %s455_s24 = sand.u32 1, %s2746_s0  }
  0x70   : > { %s2202_s2 = sshll.u32 %s455_s24, 3 }
  0x71   : > { %s457_s28 = scalar_lea.vmem [#allocation5], %s2202_s2 }
  0x72   : > { %1793 = dma.done.wait (%p2061_p2), %s454_s21, 128  }
  0x73   : > { %1795 = vsyncadd (%p2061_p2), %s454_s21, 4294967168  ;;  %s2748_s12 = sld [smem:[#allocation21_spill]] }
  0x79   : > { %s465_s26 = sand.u32 1, %s2748_s12  }
  0x7a   : > { %s2210_s9 = sshll.u32 %s465_s26, 3 }
  0x7b   : > { %s467_s6 = scalar_lea.vmem [#allocation7], %s2210_s9 }
  0x7c   : > { %1797 = dma.done.wait (%p2169_p8), %s454_s21, 128  }
  0x7d   : > { %1799 = vsyncadd (%p2169_p8), %s454_s21, 4294967168 }
  0x7e   : > { %1801 = dma.done.wait (%p65_p1), [#allocation9], 2304  }
  0x7f   : > { %1803 = vsyncadd (%p65_p1), [#allocation9], 4294964992 }
  0x80   : > { %1805 = dma.done.wait (%p65_p1), [#allocation12], 2048  }
  0x81   : > { %1807 = vsyncadd (%p65_p1), [#allocation12], 4294965248  ;;  %v553_v0 = vld [vmem:[#allocation8 + $0x78] sm:$0xff]  ;;  %v552_v1 = vld [vmem:[#allocation8 + $0x70] sm:$0xff]  ;;  %s2749_s23 = sld [smem:[#allocation24_spill]]  ;;  %v625_v24 = vlaneseq  ;;  %s527_s21 = scalar_lea.vmem [#allocation13], %s1277_s8 }
  0x82   : > { %584 = vmatpush.msra.mxu0 %v553_v0  ;;  %1308 = vmatpush.msra.mxu2 %v553_v0  ;;  %v551_v2 = vld [vmem:[#allocation8 + $0x68] sm:$0xff]  ;;  %v550_v3 = vld [vmem:[#allocation8 + $0x60] sm:$0xff]  ;;  %v549_v4 = vld [vmem:[#allocation8 + $0x58] sm:$0xff]  ;;  %s2750_s25 = sld [smem:[#allocation40_spill]]  ;;  %v1873_v0 = vmov 0.0   ;;  %s1067_s8 = scalar_lea.sflag [#allocation4], %s2188_s27 }
  0x83   : > { %v548_v5 = vld [vmem:[#allocation8 + $0x50] sm:$0xff]  ;;  %v547_v6 = vld [vmem:[#allocation8 + $0x48] sm:$0xff]  ;;  %v546_v7 = vld [vmem:[#allocation8 + $0x40] sm:$0xff]  ;;  %v2240_v26 = vshrl.u32 %v625_v24, 7  ;;  %s2767_s0 = sld [smem:[#allocation42_spill]] }
  0x84   : > { %585 = vmatpush.msra.mxu0 %v552_v1  ;;  %1309 = vmatpush.msra.mxu2 %v552_v1  ;;  %v545_v8 = vld [vmem:[#allocation8 + $0x38] sm:$0xff]  ;;  %v544_v9 = vld [vmem:[#allocation8 + $0x30] sm:$0xff]  ;;  %v543_v10 = vld [vmem:[#allocation8 + $0x28] sm:$0xff]  ;;  %s2768_s5 = sld [smem:[#allocation25_spill]] }
  0x85   : > { %v542_v11 = vld [vmem:[#allocation8 + $0x20] sm:$0xff]  ;;  %v541_v12 = vld [vmem:[#allocation8 + $0x18] sm:$0xff]  ;;  %v540_v13 = vld [vmem:[#allocation8 + $0x10] sm:$0xff]  ;;  %v627_v29 = vadd.s32 8, %v2240_v26  ;;  %v2245_v30 = vadd.s32 16, %v2240_v26  ;;  %vm670_vm0 = vcmp.lt.s32.totalorder %v2240_v26, 1 }
  0x86   : > { %586 = vmatpush.msra.mxu0 %v551_v2  ;;  %1310 = vmatpush.msra.mxu2 %v551_v2  ;;  %v539_v14 = vld [vmem:[#allocation8 + $0x8] sm:$0xff]  ;;  %v538_v15 = vld [vmem:[#allocation8] sm:$0xff]  ;;  %v578_v19 = vld [vmem:[%s2194_s13 + $0x10] sm:$0xff]  ;;  %vm683_vm1 = vcmp.lt.s32.totalorder %v2240_v26, 7  ;;  %v694_v61 = vand.u32 7, %v2240_v26  ;;  %s2769_s2 = sld [smem:[#allocation44_spill]] }
  0x87   : > { %v575_v16 = vld [vmem:[%s457_s28] sm:$0xff]  ;;  %v579_v20 = vld [vmem:[%s2194_s13 + $0x18] sm:$0xff]  ;;  %p619_p1 = scmp.gt.s32.totalorder %s2749_s23, 0  ;;  %p622_p3 = scmp.lt.s32.totalorder %s2749_s23, 1  ;;  %v701_v39 = vand.u32 7, %v627_v29  ;;  %v708_v40 = vand.u32 7, %v2245_v30 }
  0x88   : > { %587 = vmatpush.msra.mxu0 %v550_v3  ;;  %1311 = vmatpush.msra.mxu2 %v550_v3  ;;  %v577_v17 = vld [vmem:[%s2194_s13 + $0x8] sm:$0xff]  ;;  %v576_v18 = vld [vmem:[%s2194_s13] sm:$0xff]  ;;  %v580_v21 = vld [vmem:[%s467_s6] sm:$0xff]  ;;  %vm2395_vm6 = vcmp.gt.s32.totalorder %v694_v61, 0  ;;  %vm2442_vm9 = vcmp.lt.s32.totalorder %v694_v61, 7  ;;  %s1297_s28 = sshll.u32 %s2749_s23, 2 }
  0x89   : > { %s620_s17 = scalar_select %p619_p1, 1, 0  ;;  %v2237_v22 = vld [vmem:[%s2750_s25] ss:$0 sm:$0xff]  ;;  %v573_v33 = vld [vmem:[#allocation11 + $0x78] sm:$0xff]  ;;  %v571_v38 = vld [vmem:[#allocation11 + $0x68] sm:$0xff] }
  0x8a   : > { %588 = vmatpush.msra.mxu0 %v549_v4  ;;  %1312 = vmatpush.msra.mxu2 %v549_v4  ;;  %v572_v34 = vld [vmem:[#allocation11 + $0x70] sm:$0xff]  ;;  %s2249_s4 = scalar_select %p622_p3, 1, 0  ;;  %v570_v45 = vld [vmem:[#allocation11 + $0x60] sm:$0xff]  ;;  %v569_v50 = vld [vmem:[#allocation11 + $0x58] sm:$0xff]  ;;  %vm2272_vm2 = vcmp.gt.s32.totalorder %v701_v39, 0 }
  0x8b   : > { %s621_s29 = scvt.s32.f32 %s620_s17  ;;  %v555_v35 = vld [vmem:[#allocation10] sm:$0xff]  ;;  %1324 = vmatpush.msra.mxu3 %v573_v33  ;;  %1033 = vmatpush.msra.mxu1 %v573_v33  ;;  %vm2276_vm3 = vcmp.lt.s32.totalorder %v701_v39, 7  ;;  %vm2286_vm4 = vcmp.gt.s32.totalorder %v708_v40, 0  ;;  %v2307_v1 = vsel %vm2272_vm2, 1.0, %v1873_v0  ;;  %v565_v24 = vld [vmem:[#allocation11 + $0x38] sm:$0xff]  ;;  %vm2355_vm5 = vcmp.lt.s32.totalorder %v708_v40, 7 }
  0x8c   : > { %589 = vmatpush.msra.mxu0 %v548_v5  ;;  %1313 = vmatpush.msra.mxu2 %v548_v5  ;;  %v2259_v42 = vperm.slane %v555_v35, 1  ;;  %v2261_v43 = vperm.slane %v555_v35, 7  ;;  %v2266_v46 = vperm.slane %v555_v35, 4  ;;  %v2268_v47 = vperm.slane %v555_v35, 0  ;;  %s624_s10 = scvt.s32.f32 %s2249_s4  ;;  %v568_v60 = vld [vmem:[#allocation11 + $0x50] sm:$0xff]  ;;  %v567_v5 = vld [vmem:[#allocation11 + $0x48] sm:$0xff] }
  0x8d   : > { %v651_v27 = vstv %s621_s29  ;;  %1325 = vmatpush.msra.mxu3 %v572_v34  ;;  %1034 = vmatpush.msra.mxu1 %v572_v34  ;;  %v2280_v53 = vperm.slane %v555_v35, 3  ;;  %v2282_v54 = vperm.slane %v555_v35, 6  ;;  %v2284_v55 = vperm.slane %v555_v35, 2  ;;  %v563_v52 = vld [vmem:[#allocation11 + $0x28] sm:$0xff]  ;;  %s1298_s12 = sshll.u32 %s2768_s5, 3  ;;  %s2770_s19 = sld [smem:[#allocation45_spill]] }
  0x8e   : > { %590 = vmatpush.msra.mxu0 %v547_v6  ;;  %1314 = vmatpush.msra.mxu2 %v547_v6  ;;  %v2296_v59 = vperm.slane %v555_v35, 5  ;;  %v2302_v63 = vstv %s624_s10  ;;  %v2312_v2 = vsel %vm2276_vm3, 1.0, %v1873_v0  ;;  %v2319_v6 = vsel %vm2286_vm4, 1.0, %v1873_v0  ;;  %s1078_s26 = sadd.s32 %s1298_s12, %s1297_s28  ;;  %s1081_s29 = sshll.u32 %s527_s21, 4  ;;  %s1082_s29 = int_to_ptr.vmem [resolvable:$true] %s1081_s29 }
  0x8f   : > { %1326 = vmatpush.msra.mxu3 %v571_v38  ;;  %1035 = vmatpush.msra.mxu1 %v571_v38  ;;  %v564_v38 = vld [vmem:[#allocation11 + $0x30] sm:$0xff]  ;;  %s1299_s9 = sshll.u32 %s1078_s26, 3 }
  0x90   : > { %591 = vmatpush.msra.mxu0 %v546_v7  ;;  %1315 = vmatpush.msra.mxu2 %v546_v7  ;;  %v2322_v7 = vadd.s32 24, %v2240_v26 }
  0x91   : > { %1327 = vmatpush.msra.mxu3 %v570_v45  ;;  %1036 = vmatpush.msra.mxu1 %v570_v45 }
  0x92   : > { %592 = vmatpush.msra.mxu0 %v545_v8  ;;  %1316 = vmatpush.msra.mxu2 %v545_v8 }
  0x93   : > { %1328 = vmatpush.msra.mxu3 %v569_v50  ;;  %1037 = vmatpush.msra.mxu1 %v569_v50  ;;  %s2771_s3 = smov %s2770_s19  ;;  %s1080_s25 = scalar_lea.hbm %s2770_s19, %s1299_s9 }
  0x94   : > { %593 = vmatpush.msra.mxu0 %v544_v9  ;;  %1317 = vmatpush.msra.mxu2 %v544_v9  ;;  %s1083_s4 = sshll.u32 %s1080_s25, 4  ;;  %s1084_s4 = int_to_ptr.hbm [resolvable:$true] %s1083_s4 }
  0x95   : > { %1329 = vmatpush.msra.mxu3 %v568_v60  ;;  %1038 = vmatpush.msra.mxu1 %v568_v60  ;;  %v2391_v60 = vld [vmem:[#allocation10 + $0x8] ss:$0 sm:$0xff]  ;;  %s1718_s23 = sshra.s32 %s1084_s4, 4  ;;  %s1719_s23 = int_to_ptr.hbm [resolvable:$true] %s1718_s23 }
  0x96   : > { %594 = vmatpush.msra.mxu0 %v543_v10  ;;  %1318 = vmatpush.msra.mxu2 %v543_v10  ;;  %s1720_s10 = scalar_lea.hbm %s1719_s23, 32  ;;  %p1725_p13 = scmp.lt.s32.totalorder %s1719_s23, %s2771_s3 }
  0x97   : > { %1330 = vmatpush.msra.mxu3 %v567_v5  ;;  %1039 = vmatpush.msra.mxu1 %v567_v5  ;;  %p1721_p2 = scmp.ne.s32.totalorder %s1719_s23, %s1720_s10 }
  0x98   : > { %595 = vmatpush.msra.mxu0 %v542_v11  ;;  %1319 = vmatpush.msra.mxu2 %v542_v11 }
  0x99   : > { %p1722_p8 = pnand %p1721_p2, %p2129_p5 }
  0x9a   : > { %596 = vmatpush.msra.mxu0 %v541_v12  ;;  %1320 = vmatpush.msra.mxu2 %v541_v12 }
  0x9b   : > { %p1723_p9 = pneg %p1722_p8 }
  0x9c   : > { %597 = vmatpush.msra.mxu0 %v540_v13  ;;  %1321 = vmatpush.msra.mxu2 %v540_v13 }
  0x9e   : > { %598 = vmatpush.msra.mxu0 %v539_v14  ;;  %1322 = vmatpush.msra.mxu2 %v539_v14 }
  0xa0   : > { %599 = vmatpush.msra.mxu0 %v538_v15  ;;  %1323 = vmatpush.msra.mxu2 %v538_v15 }
  0xa1   : > { %600 = vmatmul.f32.vlgmr.msra.gmra.mxu0 %v575_v16  ;;  %606 = vmatmul.f32.vlgmr.msra.gmra.mxu2 %v577_v17  ;;  %v566_v16 = vld [vmem:[#allocation11 + $0x40] sm:$0xff] }
  0xa2   : > { %1331 = vmatpush.msra.mxu3 %v566_v16  ;;  %1040 = vmatpush.msra.mxu1 %v566_v16  ;;  %v561_v16 = vld [vmem:[#allocation11 + $0x18] sm:$0xff] }
  0xa4   : > { %1332 = vmatpush.msra.mxu3 %v565_v24  ;;  %1041 = vmatpush.msra.mxu1 %v565_v24 }
  0xa6   : > { %1333 = vmatpush.msra.mxu3 %v564_v38  ;;  %1042 = vmatpush.msra.mxu1 %v564_v38 }
  0xa8   : > { %1334 = vmatpush.msra.mxu3 %v563_v52  ;;  %1043 = vmatpush.msra.mxu1 %v563_v52 }
  0xa9   : > { %603 = vmatmul.f32.gmra.mxu0 %v576_v18  ;;  %609 = vmatmul.f32.gmra.mxu2 %v578_v19 }
  0xb1   : > { %612 = vmatmul.f32.gmra.mxu2 %v579_v20 }
  0xb9   : > { %615 = vmatmul.f32.gmra.mxu2 %v580_v21 }
 0x11e   : > { %v601_v23 = vpop.f32.mrf.mxu0 }
 0x11f   : > { %v602_v25 = vadd.f32 %v2237_v22, %v601_v23 }
 0x121   : > { %v2247_v31 = vmul.f32 %v651_v27, %v602_v25 }
 0x123   : > { %v664_v41 = vrot.slane %v2247_v31, 7  ;;  %v677_v3 = vrot.slane %v2247_v31, 1  ;;  %v763_v12 = vmul.f32 %v2259_v42, %v2247_v31 }
 0x124   : > { %v607_v28 = vpop.f32.mrf.mxu2 }
 0x125   : > { %v2252_v36 = vadd.f32 %v2237_v22, %v607_v28  ;;  %v715_v28 = vand.u32 7, %v2322_v7 }
 0x126   : > { %v604_v32 = vpop.f32.mrf.mxu0 }
 0x127   : > { %v2255_v37 = vadd.f32 %v2237_v22, %v604_v32  ;;  %v666_v48 = vrot.slane %v2252_v36, 7  ;;  %v679_v13 = vrot.slane %v2252_v36, 1  ;;  %v2337_v17 = vmul.f32 %v2259_v42, %v2252_v36 }
 0x128   : > { %v2341_v18 = vmul.f32 %v2261_v43, %v2252_v36  ;;  %v769_v19 = vmul.f32 %v2266_v46, %v2252_v36  ;;  %vm2399_vm7 = vcmp.gt.s32.totalorder %v715_v28, 0  ;;  %vm2430_vm8 = vcmp.lt.s32.totalorder %v715_v28, 7 }
 0x129   : > { %v665_v44 = vrot.slane %v2255_v37, 7  ;;  %v678_v4 = vrot.slane %v2255_v37, 1  ;;  %v764_v14 = vmul.f32 %v2259_v42, %v2255_v37  ;;  %v768_v15 = vmul.f32 %v2266_v46, %v2255_v37 }
 0x12a   : > { %v1291_v61 = vsel %vm2430_vm8, 1.0, %v1873_v0 }
 0x12b   : > { %v674_v57 = vsel %vm670_vm0, %v665_v44, %v666_v48  ;;  %v675_v58 = vsel %vm670_vm0, %v664_v41, %v665_v44  ;;  %v687_v29 = vsel %vm683_vm1, %v678_v4, %v679_v13  ;;  %v688_v30 = vsel %vm683_vm1, %v677_v3, %v678_v4  ;;  %v558_v4 = vld [vmem:[#allocation11] sm:$0xff] }
 0x12c   : > { %v610_v49 = vpop.f32.mrf.mxu2  ;;  %v787_v8 = vmul.f32 %v2268_v47, %v675_v58  ;;  %v792_v9 = vmul.f32 %v2280_v53, %v674_v57  ;;  %v2369_v34 = vadd.f32 %v768_v15, %v763_v12  ;;  %v773_v35 = vadd.f32 %v769_v19, %v764_v14 }
 0x12d   : > { %v2300_v62 = vadd.f32 %v2237_v22, %v610_v49  ;;  %v788_v36 = vmul.f32 %v2268_v47, %v674_v57  ;;  %v2373_v37 = vmul.f32 %v2280_v53, %v675_v58  ;;  %v817_v49 = vmul.f32 %v2284_v55, %v688_v30 }
 0x12e   : > { %v796_v33 = vadd.f32 %v792_v9, %v787_v8  ;;  %v822_v50 = vmul.f32 %v2296_v59, %v687_v29  ;;  %v818_v56 = vmul.f32 %v2284_v55, %v687_v29  ;;  %v562_v9 = vld [vmem:[#allocation11 + $0x20] sm:$0xff] }
 0x12f   : > { %v667_v10 = vrot.slane %v2300_v62, 7  ;;  %v680_v11 = vrot.slane %v2300_v62, 1  ;;  %v778_v51 = vmul.f32 %v2261_v43, %v2300_v62  ;;  %v770_v5 = vmul.f32 %v2266_v46, %v2300_v62  ;;  %1335 = vmatpush.msra.mxu3 %v562_v9  ;;  %1044 = vmatpush.msra.mxu1 %v562_v9 }
 0x130   : > { %v766_v8 = vmul.f32 %v2259_v42, %v2300_v62  ;;  %v2423_v42 = vsel %vm2395_vm6, 1.0, %v1873_v0  ;;  %v826_v62 = vadd.f32 %v822_v50, %v817_v49 }
 0x131   : > { %v2347_v20 = vsel %vm670_vm0, %v666_v48, %v667_v10  ;;  %v2351_v21 = vsel %vm683_vm1, %v679_v13, %v680_v11  ;;  %v2380_v48 = vmul.f32 %v2282_v54, %v674_v57  ;;  %v782_v19 = vadd.f32 %v778_v51, %v773_v35  ;;  %v560_v35 = vld [vmem:[#allocation11 + $0x10] sm:$0xff]  ;;  %1336 = vmatpush.msra.mxu3 %v561_v16 }
 0x132   : > { %v801_v25 = vmul.f32 %v2282_v54, %v2347_v20  ;;  %v823_v45 = vmul.f32 %v2296_v59, %v2351_v21  ;;  %v793_v15 = vmul.f32 %v2280_v53, %v2347_v20  ;;  %v774_v30 = vadd.f32 %v770_v5, %v2337_v17  ;;  %1045 = vmatpush.msra.mxu1 %v561_v16 }
 0x133   : > { %v819_v38 = vmul.f32 %v2284_v55, %v2351_v21  ;;  %v831_v49 = vmul.f32 %v2391_v60, %v2351_v21  ;;  %v789_v50 = vmul.f32 %v2268_v47, %v2347_v20  ;;  %1337 = vmatpush.msra.mxu3 %v560_v35 }
 0x134   : > { %v613_v23 = vpop.f32.mrf.mxu2  ;;  %v805_v44 = vadd.f32 %v801_v25, %v796_v33  ;;  %v827_v13 = vadd.f32 %v823_v45, %v818_v56  ;;  %v797_v17 = vadd.f32 %v793_v15, %v788_v36  ;;  %v559_v45 = vld [vmem:[#allocation11 + $0x8] sm:$0xff]  ;;  %1046 = vmatpush.msra.mxu1 %v560_v35 }
 0x135   : > { %v2367_v32 = vadd.f32 %v2237_v22, %v613_v23  ;;  %1338 = vmatpush.msra.mxu3 %v559_v45 }
 0x136   : > { %v809_v12 = vmul.f32 %v2307_v1, %v805_v44  ;;  %v1287_v1 = vsel %vm2399_vm7, 1.0, %v1873_v0  ;;  %1047 = vmatpush.msra.mxu1 %v559_v45 }
 0x137   : > { %v668_v39 = vrot.slane %v2367_v32, 7  ;;  %v681_v40 = vrot.slane %v2367_v32, 1  ;;  %v771_v29 = vmul.f32 %v2266_v46, %v2367_v32  ;;  %v779_v21 = vmul.f32 %v2261_v43, %v2367_v32  ;;  %1339 = vmatpush.msra.mxu3 %v558_v4 }
 0x138   : > { %v813_v44 = vadd.f32 %v809_v12, %v782_v19  ;;  %1048 = vmatpush.msra.mxu1 %v558_v4 }
 0x139   : > { %v685_v58 = vsel %vm683_vm1, %v680_v11, %v681_v40  ;;  %v672_v7 = vsel %vm670_vm0, %v667_v10, %v668_v39  ;;  %v2414_v11 = vsel %vm2355_vm5, 1.0, %v1873_v0  ;;  %v775_v56 = vadd.f32 %v771_v29, %v766_v8 }
 0x13a   : > { %v832_v14 = vmul.f32 %v2391_v60, %v685_v58  ;;  %v802_v23 = vmul.f32 %v2282_v54, %v672_v7  ;;  %v794_v33 = vmul.f32 %v2280_v53, %v672_v7  ;;  %v824_v53 = vmul.f32 %v2296_v59, %v685_v58 }
 0x13b   : > { %v820_v57 = vmul.f32 %v2284_v55, %v685_v58 }
 0x13c   : > { %v616_v10 = vpop.f32.mrf.mxu2  ;;  %v836_v25 = vadd.f32 %v832_v14, %v827_v13  ;;  %v806_v36 = vadd.f32 %v802_v23, %v797_v17  ;;  %v798_v5 = vadd.f32 %v794_v33, %v789_v50  ;;  %v783_v13 = vadd.f32 %v779_v21, %v774_v30 }
 0x13d   : > { %v617_v24 = vadd.f32 %v2237_v22, %v616_v10  ;;  %v835_v14 = vadd.f32 %v831_v49, %v826_v62  ;;  %v1288_v23 = vsel %vm2442_vm9, 1.0, %v1873_v0 }
 0x13e   : > { %v840_v46 = vmul.f32 %v2312_v2, %v836_v25  ;;  %v1514_v2 = vld [vmem:[%s2767_s0] ss:$0 sm:$0xff]  ;;  %v810_v31 = vmul.f32 %v2319_v6, %v806_v36  ;;  %s1724_s0 = scalar_lea.hbm %s2771_s3, 128 }
 0x13f   : > { %v663_v28 = vmul.f32 %v2302_v63, %v617_v24  ;;  %v781_v24 = vadd.f32 %v2341_v18, %v2369_v34  ;;  %v839_v30 = vmul.f32 %v1288_v23, %v835_v14  ;;  %p1726_p0 = scmp.lt.s32.totalorder %s1724_s0, %s1720_s10 }
 0x140   : > { %v844_v52 = vadd.f32 %v840_v46, %v813_v44 }
 0x141   : > { %v669_v63 = vrot.slane %v663_v28, 7  ;;  %v682_v51 = vrot.slane %v663_v28, 1  ;;  %v780_v58 = vmul.f32 %v2261_v43, %v663_v28  ;;  %p1727_p4 = por %p1726_p0, %p1725_p13 }
 0x142   : > { %v2483_v32 = vadd.f32 %v1514_v2, %v844_v52 }
 0x143   : > { %v671_v20 = vsel %vm670_vm0, %v668_v39, %v669_v63  ;;  %v676_v7 = vsel %vm670_vm0, %v669_v63, %v664_v41  ;;  %v684_v8 = vsel %vm683_vm1, %v681_v40, %v682_v51  ;;  %v689_v55 = vsel %vm683_vm1, %v682_v51, %v677_v3  ;;  %p1728_p12 = pnand %p1727_p4, %p1723_p9 }
 0x144   : > { %v786_v39 = vmul.f32 %v2268_v47, %v676_v7  ;;  %v803_v9 = vmul.f32 %v2282_v54, %v671_v20  ;;  %v825_v12 = vmul.f32 %v2296_v59, %v684_v8  ;;  %v833_v41 = vmul.f32 %v2391_v60, %v684_v8 }
 0x145   : > { %v828_v40 = vadd.f32 %v824_v53, %v819_v38  ;;  %v834_v3 = vmul.f32 %v2391_v60, %v689_v55  ;;  %v2489_v54 = vmul.f32 0.70710677, %v2483_v32  ;;  %v784_v15 = vadd.f32 %v780_v58, %v775_v56 }
 0x146   : > { %v795_v26 = vadd.f32 %v2373_v37, %v786_v39  ;;  %v807_v43 = vadd.f32 %v803_v9, %v798_v5  ;;  %v829_v47 = vadd.f32 %v825_v12, %v820_v57  ;;  %v814_v37 = vadd.f32 %v810_v31, %v783_v13 }
 0x147   : > { %v837_v59 = vadd.f32 %v833_v41, %v828_v40  ;;  %v902_v6 = vmul.f32 %v2489_v54, %v2489_v54 }
 0x148   : > { %v804_v10 = vadd.f32 %v2380_v48, %v795_v26  ;;  %v811_v16 = vmul.f32 %v1287_v1, %v807_v43  ;;  %v838_v19 = vadd.f32 %v834_v3, %v829_v47 }
 0x149   : > { %v841_v60 = vmul.f32 %v2414_v11, %v837_v59  ;;  %v2501_v48 = vmin.f32 %v902_v6, 16.0 }
 0x14a   : > { %v808_v62 = vmul.f32 %v2423_v42, %v804_v10  ;;  %v815_v25 = vadd.f32 %v811_v16, %v784_v15  ;;  %v842_v27 = vmul.f32 %v1291_v61, %v838_v19 }
 0x14b   : > { %v845_v1 = vadd.f32 %v841_v60, %v814_v37  ;;  %v904_v35 = vmul.f32 2.1237322e-06, %v2501_v48  ;;  %v915_v11 = vmul.f32 3.8918573e-05, %v2501_v48 }
 0x14c   : > { %v812_v29 = vadd.f32 %v808_v62, %v781_v24  ;;  %v846_v33 = vadd.f32 %v842_v27, %v815_v25 }
 0x14d   : > { %v2505_v38 = vadd.f32 %v1514_v2, %v845_v1  ;;  %v905_v18 = vadd.f32 0.00028619796, %v904_v35  ;;  %v916_v34 = vadd.f32 0.001143296, %v915_v11 }
 0x14e   : > { %v843_v0 = vadd.f32 %v839_v30, %v812_v29  ;;  %v2507_v22 = vadd.f32 %v1514_v2, %v846_v33 }
 0x14f   : > { %v2510_v42 = vmul.f32 0.70710677, %v2505_v38  ;;  %v906_v46 = vmul.f32 %v905_v18, %v2501_v48  ;;  %v917_v17 = vmul.f32 %v916_v34, %v2501_v48 }
 0x150   : > { %v2512_v28 = vadd.f32 %v1514_v2, %v843_v0  ;;  %v2515_v44 = vmul.f32 0.70710677, %v2507_v22 }
 0x151   : > { %v942_v53 = vmul.f32 %v2510_v42, %v2510_v42  ;;  %v907_v61 = vadd.f32 0.0036580483, %v906_v46  ;;  %v918_v50 = vadd.f32 0.014752088, %v917_v17 }
 0x152   : > { %v2522_v45 = vmul.f32 0.70710677, %v2512_v28  ;;  %v982_v49 = vmul.f32 %v2515_v44, %v2515_v44 }
 0x153   : > { %v2526_v63 = vmin.f32 %v942_v53, 16.0  ;;  %v908_v2 = vmul.f32 %v907_v61, %v2501_v48  ;;  %v919_v36 = vmul.f32 %v918_v50, %v2501_v48 }
 0x154   : > { %v862_v51 = vmul.f32 %v2522_v45, %v2522_v45  ;;  %v2530_v52 = vmin.f32 %v982_v49, 16.0 }
 0x155   : > { %v944_v56 = vmul.f32 2.1237322e-06, %v2526_v63  ;;  %v955_v21 = vmul.f32 3.8918573e-05, %v2526_v63  ;;  %v920_v4 = vadd.f32 0.112945676, %v919_v36 }
 0x156   : > { %v2536_v57 = vmin.f32 %v862_v51, 16.0  ;;  %v984_v5 = vmul.f32 2.1237322e-06, %v2530_v52  ;;  %v909_v55 = vadd.f32 0.05243302, %v908_v2 }
 0x157   : > { %v945_v20 = vadd.f32 0.00028619796, %v944_v56  ;;  %v956_v7 = vadd.f32 0.001143296, %v955_v21  ;;  %v921_v58 = vmul.f32 %v920_v4, %v2501_v48  ;;  %v995_v40 = vmul.f32 3.8918573e-05, %v2530_v52 }
 0x158   : > { %v864_v8 = vmul.f32 2.1237322e-06, %v2536_v57  ;;  %v875_v39 = vmul.f32 3.8918573e-05, %v2536_v57  ;;  %v985_v9 = vadd.f32 0.00028619796, %v984_v5  ;;  %v910_v15 = vmul.f32 %v909_v55, %v2501_v48 }
 0x159   : > { %v946_v12 = vmul.f32 %v945_v20, %v2526_v63  ;;  %v957_v41 = vmul.f32 %v956_v7, %v2526_v63  ;;  %v922_v26 = vadd.f32 0.4994258, %v921_v58  ;;  %v996_v14 = vadd.f32 0.001143296, %v995_v40 }
 0x15a   : > { %v865_v31 = vadd.f32 0.00028619796, %v864_v8  ;;  %v876_v3 = vadd.f32 0.001143296, %v875_v39  ;;  %v986_v43 = vmul.f32 %v985_v9, %v2530_v52  ;;  %v911_v1 = vadd.f32 0.18741608, %v910_v15 }
 0x15b   : > { %v947_v47 = vadd.f32 0.0036580483, %v946_v12  ;;  %v958_v13 = vadd.f32 0.014752088, %v957_v41  ;;  %v923_v10 = vmul.f32 %v922_v26, %v2501_v48  ;;  %v997_v60 = vmul.f32 %v996_v14, %v2530_v52 }
 0x15c   : > { %v866_v59 = vmul.f32 %v865_v31, %v2536_v57  ;;  %v877_v16 = vmul.f32 %v876_v3, %v2536_v57  ;;  %v987_v37 = vadd.f32 0.0036580483, %v986_v43  ;;  %v912_v17 = vmul.f32 %v911_v1, %v2501_v48 }
 0x15d   : > { %v948_v19 = vmul.f32 %v947_v47, %v2526_v63  ;;  %v959_v6 = vmul.f32 %v958_v13, %v2526_v63  ;;  %v924_v23 = vadd.f32 1.0, %v923_v10  ;;  %v998_v27 = vadd.f32 0.014752088, %v997_v60 }
 0x15e   : > { %v867_v24 = vadd.f32 0.0036580483, %v866_v59  ;;  %v878_v62 = vadd.f32 0.014752088, %v877_v16  ;;  %v988_v11 = vmul.f32 %v987_v37, %v2530_v52  ;;  %v913_v20 = vadd.f32 1.1283791, %v912_v17 }
 0x15f   : > { %v960_v25 = vadd.f32 0.112945676, %v959_v6  ;;  %1516 = vrcp.f32 %v924_v23  ;;  %v949_v29 = vadd.f32 0.05243302, %v948_v19  ;;  %v999_v0 = vmul.f32 %v998_v27, %v2530_v52 }
 0x160   : > { %v868_v33 = vmul.f32 %v867_v24, %v2536_v57  ;;  %v879_v35 = vmul.f32 %v878_v62, %v2536_v57  ;;  %v989_v2 = vadd.f32 0.05243302, %v988_v11  ;;  %v936_v48 = vand.u32 2147483648, %v924_v23 }
 0x161   : > { %v961_v30 = vmul.f32 %v960_v25, %v2526_v63  ;;  %v1000_v46 = vadd.f32 0.112945676, %v999_v0  ;;  %v950_v53 = vmul.f32 %v949_v29, %v2526_v63  ;;  %v934_v12 = vand.u32 2147483647, %v924_v23 }
 0x162   : > { %v880_v34 = vadd.f32 0.112945676, %v879_v35  ;;  %v869_v50 = vadd.f32 0.05243302, %v868_v33  ;;  %v990_v39 = vmul.f32 %v989_v2, %v2530_v52  ;;  %vm930_vm11 = vweird.f32 %v924_v23 }
 0x163   : > { %v962_v18 = vadd.f32 0.4994258, %v961_v30  ;;  %v1001_v36 = vmul.f32 %v1000_v46, %v2530_v52  ;;  %v951_v8 = vadd.f32 0.18741608, %v950_v53  ;;  %v937_v43 = vor.u32 1.1754944e-38, %v936_v48 }
 0x164   : > { %v881_v51 = vmul.f32 %v880_v34, %v2536_v57  ;;  %v870_v55 = vmul.f32 %v869_v50, %v2536_v57  ;;  %v991_v13 = vadd.f32 0.18741608, %v990_v39  ;;  %v914_v14 = vmul.f32 %v913_v20, %v2489_v54 }
 0x165   : > { %v963_v49 = vmul.f32 %v962_v18, %v2526_v63  ;;  %v1517_v61 = vpop.eup %1516  ;;  %v1002_v5 = vadd.f32 0.4994258, %v1001_v36  ;;  %v952_v26 = vmul.f32 %v951_v8, %v2526_v63  ;;  %vm935_vm13 = vcmp.eq.f32.partialorder %v934_v12, 8.507059e+37 }
 0x166   : > { %v926_v56 = vmul.f32 %v1517_v61, %v924_v23  ;;  %v882_v4 = vadd.f32 0.4994258, %v881_v51  ;;  %vm931_vm10 = vweird.f32 %v1517_v61  ;;  %v871_v47 = vadd.f32 0.18741608, %v870_v55 }
 0x167   : > { %v964_v21 = vadd.f32 1.0, %v963_v49  ;;  %v1003_v41 = vmul.f32 %v1002_v5, %v2530_v52  ;;  %vm932_vm12 = vmor %vm930_vm11, %vm931_vm10  ;;  %v953_v6 = vadd.f32 1.1283791, %v952_v26  ;;  %v992_v60 = vmul.f32 %v991_v13, %v2530_v52  ;;  %v1515_v13 = vld [vmem:[%s2769_s2] ss:$0 sm:$0xff] }
 0x168   : > { %v927_v7 = vsub.f32 1.0, %v926_v56  ;;  %v883_v58 = vmul.f32 %v882_v4, %v2536_v57  ;;  %v872_v37 = vmul.f32 %v871_v47, %v2536_v57  ;;  %v855_v27 = vmul.f32 0.5, %v2483_v32 }
 0x169   : > { %1518 = vrcp.f32 %v964_v21  ;;  %v2570_v3 = vadd.f32 1.0, %v1003_v41  ;;  %v974_v24 = vand.u32 2147483647, %v964_v21  ;;  %v976_v62 = vand.u32 2147483648, %v964_v21 }
 0x16a   : > { %v928_v9 = vmul.f32 %v1517_v61, %v927_v7  ;;  %v2567_v31 = vadd.f32 1.0, %v883_v58  ;;  %v954_v30 = vmul.f32 %v953_v6, %v2510_v42  ;;  %vm970_vm15 = vweird.f32 %v964_v21 }
 0x16b   : > { %v873_v11 = vadd.f32 1.1283791, %v872_v37  ;;  %v993_v57 = vadd.f32 1.1283791, %v992_v60  ;;  %vm975_vm1 = vcmp.eq.f32.partialorder %v974_v24, 8.507059e+37  ;;  %v977_v18 = vor.u32 1.1754944e-38, %v976_v62 }
 0x16c   : > { %v929_v40 = vadd.f32 %v1517_v61, %v928_v9  ;;  %1520 = vrcp.f32 %v2567_v31  ;;  %v894_v46 = vand.u32 2147483647, %v2567_v31  ;;  %v896_v17 = vand.u32 2147483648, %v2567_v31 }
 0x16d   : > { %1522 = vrcp.f32 %v2570_v3  ;;  %v1014_v2 = vand.u32 2147483647, %v2570_v3  ;;  %v856_v36 = vmul.f32 0.5, %v2505_v38  ;;  %v874_v56 = vmul.f32 %v873_v11, %v2522_v45 }
 0x16e   : > { %v933_v15 = vsel %vm932_vm12, %v1517_v61, %v929_v40  ;;  %v1016_v61 = vand.u32 2147483648, %v2570_v3  ;;  %vm890_vm4 = vweird.f32 %v2567_v31  ;;  %v897_v5 = vor.u32 1.1754944e-38, %v896_v17 }
 0x16f   : > { %v1519_v59 = vpop.eup %1518  ;;  %v938_v10 = vsel %vm935_vm13, %v937_v43, %v933_v15  ;;  %vm1010_vm6 = vweird.f32 %v2570_v3  ;;  %vm895_vm7 = vcmp.eq.f32.partialorder %v894_v46, 8.507059e+37  ;;  %v994_v8 = vmul.f32 %v993_v57, %v2515_v44 }
 0x170   : > { %v966_v16 = vmul.f32 %v1519_v59, %v964_v21  ;;  %v939_v19 = vmul.f32 %v938_v10, %v914_v14  ;;  %vm971_vm14 = vweird.f32 %v1519_v59  ;;  %v1017_v48 = vor.u32 1.1754944e-38, %v1016_v61 }
 0x171   : > { %vm972_vm0 = vmor %vm970_vm15, %vm971_vm14  ;;  %vm1015_vm9 = vcmp.eq.f32.partialorder %v1014_v2, 8.507059e+37  ;;  %v854_v40 = vmul.f32 0.5, %v2512_v28  ;;  %v857_v43 = vmul.f32 0.5, %v2507_v22 }
 0x172   : > { %v967_v63 = vsub.f32 1.0, %v966_v16  ;;  %v1293_v23 = vclamps-f32 %v939_v19, 1.0  ;;  %v1521_v25 = vpop.eup %1520 }
 0x173   : > { %v1523_v1 = vpop.eup %1522  ;;  %v886_v33 = vmul.f32 %v1521_v25, %v2567_v31  ;;  %vm891_vm2 = vweird.f32 %v1521_v25 }
 0x174   : > { %v968_v54 = vmul.f32 %v1519_v59, %v967_v63  ;;  %v1023_v29 = vadd.f32 1.0, %v1293_v23  ;;  %v1006_v52 = vmul.f32 %v1523_v1, %v2570_v3  ;;  %vm1011_vm3 = vweird.f32 %v1523_v1  ;;  %vm892_vm5 = vmor %vm890_vm4, %vm891_vm2 }
 0x175   : > { %v887_v34 = vsub.f32 1.0, %v886_v33  ;;  %vm1012_vm8 = vmor %vm1010_vm6, %vm1011_vm3 }
 0x176   : > { %v969_v35 = vadd.f32 %v1519_v59, %v968_v54  ;;  %v1027_v0 = vmul.f32 %v1023_v29, %v855_v27  ;;  %v1007_v53 = vsub.f32 1.0, %v1006_v52 }
 0x177   : > { %v888_v49 = vmul.f32 %v1521_v25, %v887_v34 }
 0x178   : > { %v973_v32 = vsel %vm972_vm0, %v1519_v59, %v969_v35  ;;  %1052 = vmatmul.f32.vlgmr.msra.gmra.mxu3 %v1027_v0  ;;  %v1008_v51 = vmul.f32 %v1523_v1, %v1007_v53 }
 0x179   : > { %v978_v42 = vsel %vm975_vm1, %v977_v18, %v973_v32  ;;  %v889_v21 = vadd.f32 %v1521_v25, %v888_v49 }
 0x17a   : > { %v979_v50 = vmul.f32 %v978_v42, %v954_v30  ;;  %v1009_v20 = vadd.f32 %v1523_v1, %v1008_v51 }
 0x17b   : > { %v893_v7 = vsel %vm892_vm5, %v1521_v25, %v889_v21 }
 0x17c   : > { %v1294_v4 = vclamps-f32 %v979_v50, 1.0  ;;  %v898_v58 = vsel %vm895_vm7, %v897_v5, %v893_v7  ;;  %v1013_v38 = vsel %vm1012_vm8, %v1523_v1, %v1009_v20 }
 0x17d   : > { %v899_v45 = vmul.f32 %v898_v58, %v874_v56  ;;  %v1018_v39 = vsel %vm1015_vm9, %v1017_v48, %v1013_v38 }
 0x17e   : > { %v1024_v55 = vadd.f32 1.0, %v1294_v4  ;;  %v1019_v12 = vmul.f32 %v1018_v39, %v994_v8 }
 0x17f   : > { %v1292_v41 = vclamps-f32 %v899_v45, 1.0 }
 0x180   : > { %v1028_v9 = vmul.f32 %v1024_v55, %v856_v36  ;;  %v1295_v31 = vclamps-f32 %v1019_v12, 1.0 }
 0x181   : > { %v1022_v26 = vadd.f32 1.0, %v1292_v41 }
 0x182   : > { %1055 = vmatmul.f32.gmra.mxu3 %v1028_v9  ;;  %v1025_v44 = vadd.f32 1.0, %v1295_v31 }
 0x183   : > { %v1026_v3 = vmul.f32 %v1022_v26, %v854_v40 }
 0x184   : > { %v1029_v47 = vmul.f32 %v1025_v44, %v857_v43 }
 0x185   : > { %1049 = vmatmul.f32.vlgmr.msra.gmra.mxu1 %v1026_v3 }
 0x18a   : > { %1058 = vmatmul.f32.gmra.mxu3 %v1029_v47 }
 0x1fb   : > { %v1053_v59 = vpop.f32.mrf.mxu3 }
 0x1fc   : > { %v1054_v14 = vadd.f32 %v1515_v13, %v1053_v59 }
 0x1fe   : > { %1063 = vst [vmem:[%s527_s21 + $0x8] sm:$0xff] %v1054_v14 }
 0x202   : > { %v1050_v28 = vpop.f32.mrf.mxu1 }
 0x203   : > { %v1051_v15 = vadd.f32 %v1515_v13, %v1050_v28 }
 0x205   : > { %v1056_v10 = vpop.f32.mrf.mxu3  ;;  %1062 = vst [vmem:[%s527_s21] sm:$0xff] %v1051_v15 }
 0x206   : > { %v1057_v22 = vadd.f32 %v1515_v13, %v1056_v10 }
 0x208   : > { %1064 = vst [vmem:[%s527_s21 + $0x10] sm:$0xff] %v1057_v22 }
 0x20d   : > { %v1059_v16 = vpop.f32.mrf.mxu3 }
 0x20e   : > { %v1060_v19 = vadd.f32 %v1515_v13, %v1059_v16 }
 0x210   : > { %1065 = vst [vmem:[%s527_s21 + $0x18] sm:$0xff] %v1060_v19 }
 0x211   : > { %1731 = shalt.err (!%p1728_p12)
}
 0x212   : > { %s1874_s27 = smov 128   ;;  %s1875_s24 = smov 8  }
 0x213   : > { %1358 = dma.vmem_to_hbm [thread:$0]  (%p2129_p5), %s1082_s29, 512, %s1084_s4, %s1067_s8, %s1874_s27, %s1874_s27, %s1875_s24  }
 0x214 PF: > { %p1391_p10 = scmp.ge.s32.totalorder %s1866_s22, 2  ;;  %s1098_s2 = sand.u32 1, %s1838_s15  }
 0x215   : > { %s1099_s21 = scalar_lea.sflag [#allocation4], %s1098_s2 }
 0x216   : > { %p1381_p7 = pnand %p1391_p10, %p2133_p11 }
 0x218   : > { %p1382_p6 = pneg %p1381_p7 }
 0x21a   : > { %1809 = dma.done.wait (%p1382_p6), %s1099_s21, 512  }
 0x21b   : > { %1811 = vsyncadd (%p1382_p6), %s1099_s21, 4294966784  ;;  %s30_s22 = sadd.s32 1, %s1866_s22   ;;  %s2773_s30 = sld [smem:[#allocation21_spill]] }
 0x21c   : > { %p2618_p1 = scmp.ge.s32.totalorder %s30_s22, 6   ;;  %s2774_s12 = sld [smem:[#allocation22_spill]] }
 0x21d   : > { %s2775_s20 = sld [smem:[#allocation34_spill]]  ;;  %s2782_s10 = smov %s1822_s11 }
 0x21e   : > { %s2776_s26 = sld [smem:[#allocation23_spill]]  ;;  %s2783_s11 = smov %s2175_s1 }
 0x21f   : > { %s2777_s17 = sld [smem:[#allocation35_spill]]  ;;  %s2784_s13 = smov %s1834_s14 }
 0x220   : > { %s2778_s18 = sld [smem:[#allocation26_spill]]  ;;  %s2786_s15 = smov %s1842_s16 }
 0x221   : > { %s2779_s19 = sld [smem:[#allocation27_spill]] }
 0x222   : > { %s2780_s9 = sld [smem:[#allocation29_spill]] }
 0x223   : > { %s2781_s21 = sld [smem:[#allocation30_spill]]  ;;  %s2785_s14 = smov %s2775_s20 }
 0x224   : > { %s2787_s16 = smov %s2776_s26  ;;  %29 = sbr.rel (!%p2618_p1) target bundleno = 25 (0x19), region = 137 }
 0x228   : > { %s2788_s20 = smov %s2780_s9 }
 0x229   :  { %1105 = vsyncpa [#allocation3], 1 }
 0x22a   :  { %1107 = vsyncpa [#allocation3 + $0x1], 1 }
 0x22b   :  { %1108 = vsyncpa [#allocation6], 1 }
 0x22c   :  { %1110 = vsyncpa [#allocation6 + $0x1], 1 }
 0x22d   :  { %1111 = vsyncpa [#allocation9], 1 }
 0x22e   :  { %1112 = vsyncpa [#allocation12], 1 }
 0x22f   :  { %1113 = vsyncpa [#allocation4], 1 }
 0x230   :  { %1115 = vsyncpa [#allocation4 + $0x1], 1 }

// kernel: tpu_custom_call.1
= control target key start
LH: loop header
LB: loop body
LE: loop exit
PB: predicated region body
PF: predicated region fallthrough
CT: control target
= control target key end

     0   :  { %s2665_s0 = inlined_call_operand.hbm [shape: f32[2,8,8,128], index: 0, kind: input, shape index: {}]   ;;  %s2666_s1 = inlined_call_operand.hbm [shape: f32[2,8,8,128], index: 1, kind: input, shape index: {}]   ;;  %s2667_s2 = inlined_call_operand.hbm [shape: f32[2,8,8,128], index: 2, kind: input, shape index: {}]   ;;  %s2668_s3 = inlined_call_operand.hbm [shape: f32[128,128], index: 3, kind: input, shape index: {}]   ;;  %s2669_s4 = inlined_call_operand.vmem [shape: f32[1,128], index: 4, kind: input, shape index: {}]   ;;  %s2670_s5 = inlined_call_operand.hbm [shape: f32[9,128], index: 5, kind: input, shape index: {}]   ;;  %s2671_s6 = inlined_call_operand.vmem [shape: f32[1,128], index: 6, kind: input, shape index: {}]   ;;  %s2672_s7 = inlined_call_operand.hbm [shape: f32[128,128], index: 7, kind: input, shape index: {}]   ;;  %s2673_s8 = inlined_call_operand.vmem [shape: f32[1,128], index: 8, kind: input, shape index: {}]   ;;  %s2674_s9 = inlined_call_operand.hbm [shape: f32[2,8,8,128], index: 9, kind: output, shape index: {}]  }
   0x1   :  { %2695 = sst [smem:[#allocation36_spill]] %s2665_s0 }
   0x2   :  { %2696 = sst [smem:[#allocation37_spill]] %s2666_s1 }
   0x3   :  { %2697 = sst [smem:[#allocation38_spill]] %s2667_s2 }
   0x4   :  { %2698 = sst [smem:[#allocation39_spill]] %s2668_s3 }
   0x5   :  { %2699 = sst [smem:[#allocation40_spill]] %s2669_s4 }
   0x6   :  { %2700 = sst [smem:[#allocation41_spill]] %s2670_s5 }
   0x7   :  { %2701 = sst [smem:[#allocation42_spill]] %s2671_s6 }
   0x8   :  { %2702 = sst [smem:[#allocation43_spill]] %s2672_s7 }
   0x9   :  { %2703 = sst [smem:[#allocation44_spill]] %s2673_s8 }
   0xa   :  { %2704 = sst [smem:[#allocation45_spill]] %s2674_s9 }
   0xb   :  { %14 = vsyncpa [#allocation3], 0 }
   0xc   :  { %16 = vsyncpa [#allocation3 + $0x1], 0 }
   0xd   :  { %17 = vsyncpa [#allocation6], 0 }
   0xe   :  { %19 = vsyncpa [#allocation6 + $0x1], 0 }
   0xf   :  { %20 = vsyncpa [#allocation9], 0 }
  0x10   :  { %21 = vsyncpa [#allocation12], 0 }
  0x11   :  { %22 = vsyncpa [#allocation4], 0 }
  0x12   :  { %24 = vsyncpa [#allocation4 + $0x1], 0  ;;  %s1926_s30 = smov 0   ;;  %s1928_s10 = smov 0  }
  0x13   :  { %s1930_s11 = smov 0   ;;  %s1932_s12 = smov 0  }
  0x14   :  { %s1934_s13 = smov 0   ;;  %s1936_s14 = smov 0  }
  0x15   :  { %s1938_s15 = smov 0   ;;  %s1940_s16 = smov 0  }
  0x16   :  { %s1942_s17 = smov 0   ;;  %s1944_s18 = smov 0  }
  0x17   :  { %s1946_s19 = smov 0   ;;  %s1948_s20 = smov 0  }
  0x18   :  { %s1950_s21 = smov 0   ;;  %s1952_s22 = smov 0  }
  0x19 LB: > { %2705 = sst [smem:[#allocation20_spill]] %s1814_s30  ;;  %s1997_s23 = sadd.s32 4294967295, %s1866_s22   ;;  %s1866_s22 = sphi %s1952_s22, %s30_s22   ;;  %s1862_s21 = sphi %s1950_s21, %s2781_s21   ;;  %s1858_s20 = sphi %s1948_s20, %s2788_s20   ;;  %s1854_s19 = sphi %s1946_s19, %s2779_s19   ;;  %s1850_s18 = sphi %s1944_s18, %s2778_s18   ;;  %s1846_s17 = sphi %s1942_s17, %s2777_s17   ;;  %s1842_s16 = sphi %s1940_s16, %s2787_s16   ;;  %s1838_s15 = sphi %s1938_s15, %s2786_s15   ;;  %s1834_s14 = sphi %s1936_s14, %s2785_s14   ;;  %s1830_s13 = sphi %s1934_s13, %s2784_s13   ;;  %s1826_s12 = sphi %s1932_s12, %s2774_s12   ;;  %s1822_s11 = sphi %s1930_s11, %s2783_s11   ;;  %s1818_s10 = sphi %s1928_s10, %s2782_s10   ;;  %s1814_s30 = sphi %s1926_s30, %s2773_s30  }
  0x1a   : > { %2706 = sst [smem:[#allocation21_spill]] %s1818_s10  ;;  %p1258_p0 = scmp.ge.s32.totalorder %s1866_s22, 1 }
  0x1b   : > { %2707 = sst [smem:[#allocation22_spill]] %s1830_s13  ;;  %p65_p1 = scmp.eq.s32.totalorder %s1997_s23, 0 }
  0x1c   : > { %2708 = sst [smem:[#allocation23_spill]] %s1846_s17  ;;  %p301_p2 = scmp.lt.s32.totalorder %s1866_s22, 5 }
  0x1d   : > { %2709 = sst [smem:[#allocation24_spill]] %s1850_s18  ;;  %s1868_s28 = smov [#allocation8]  }
  0x1e   : > { %2710 = sst [smem:[#allocation25_spill]] %s1854_s19  ;;  %p2005_p3 = pnand %p1258_p0, %p301_p2 }
  0x1f   : > { %2711 = sst [smem:[#allocation26_spill]] %s1858_s20  ;;  %s314_s29 = sshll.u32 %s1868_s28, 4  ;;  %s315_s29 = int_to_ptr.vmem [resolvable:$true] %s314_s29 }
  0x20   : > { %2712 = sst [smem:[#allocation27_spill]] %s1862_s21  ;;  %p1360_p4 = pneg %p2005_p3 }
  0x21   : > { %s2713_s3 = sld [smem:[#allocation39_spill]]  ;;  %s2676_s24 = smov 128  }
  0x22   : > { %s2714_s27 = scalar_select %p2005_p3, 1, 0 }
  0x23   : > { %p2013_p5 = pnand %p1360_p4, %p65_p1  ;;  %s2678_s25 = smov 8  }
  0x24   : > { %2715 = sst [smem:[#allocation28_spill]] %s2714_s27  ;;  %s42_s8 = sadd.s32 1, %s1862_s21 }
  0x25   : > { %p59_p7 = scmp.eq.s32.totalorder %s1866_s22, 0  ;;  %s2026_s28 = sshll.u32 %s1858_s20, 2 }
  0x26   : > { %p94_p12 = scmp.ne.s32.totalorder %s1834_s14, %s1830_s13  ;;  %p100_p0 = scmp.ne.s32.totalorder %s1830_s13, %s1826_s12 }
  0x27   : > { %s312_s26 = sshll.u32 %s2713_s3, 4  ;;  %s39_s3 = sadd.s32 1, %s1858_s20  ;;  %s313_s26 = int_to_ptr.hbm [resolvable:$true] %s312_s26 }
  0x28   : > { %1363 = dma.hbm_to_vmem [thread:$0]  (!%p2013_p5), %s313_s26, 2048, %s315_s29, [#allocation9], %s2676_s24, %s2676_s24, %s2678_s25  }
  0x29   : > { %p40_p6 = scmp.ge.s32.totalorder %s39_s3, 2  ;;  %s1253_s26 = sadd.s32 4294967295, %s2026_s28 }
  0x2a   : > { %p76_p9 = scmp.gt.s32.totalorder %s1253_s26, 0  ;;  %s87_s24 = sadd.s32 1, %s1834_s14 }
  0x2b   : > { %s2790_s3 = smov (%p40_p6, %s39_s3), 0  ;;  %s2792_s8 = smov (!%p40_p6, %s42_s8), %s1862_s21 }
  0x2c   : > { %2717 = sst [smem:[#allocation29_spill]] %s2790_s3  ;;  %s47_s19 = ssub.s32 %s1858_s20, %s2790_s3 }
  0x2d   : > { %p44_p8 = scmp.ge.s32.totalorder %s2792_s8, 2  ;;  %s1254_s29 = sshll.u32 %s2790_s3, 2 }
  0x2e   : > { %s2796_s26 = smov (!%p76_p9, %s1253_s26), 0  ;;  %s1255_s6 = sadd.s32 4294967295, %s1254_s29 }
  0x2f   : > { %s2794_s8 = smov (%p44_p8, %s2792_s8), 0  ;;  %p80_p10 = scmp.gt.s32.totalorder %s1255_s6, 0 }
  0x30   : > { %2718 = sst [smem:[#allocation30_spill]] %s2794_s8  ;;  %s2040_s25 = ssub.s32 %s1862_s21, %s2794_s8 }
  0x31   : > { %2719 = sst [smem:[#allocation31_spill]] %s2040_s25  ;;  %s2043_s20 = sor.u32 %s47_s19, %s2040_s25 }
  0x32   : > { %p49_p11 = scmp.eq.s32.totalorder %s2043_s20, 0  ;;  %s2798_s6 = smov (!%p80_p10, %s1255_s6), 0 }
  0x33   : > { %p2050_p13 = por %p94_p12, %p59_p7  ;;  %s83_s8 = ssub.s32 %s2796_s26, %s2798_s6 }
  0x34   : > { %s2056_s4 = sadd.s32 4, %s1254_s29  ;;  %s84_s19 = sor.u32 %s83_s8, %s2040_s25 }
  0x35   : > { %2721 = sst [smem:[#allocation32_spill]] %s2056_s4  ;;  %p2061_p2 = por %p100_p0, %p65_p1 }
  0x36   : > { %p85_p4 = scmp.eq.s32.totalorder %s84_s19, 0  ;;  %p116_p6 = scmp.lt.s32.totalorder %s2056_s4, 7 }
  0x37   : > { %s2722_s18 = scalar_select %p2061_p2, 1, 0 }
  0x38   : > { %p2694_p8 = scmp.lt.s32.totalorder %s1866_s22, 4  ;;  %s2068_s27 = sshll.u32 %s1862_s21, 3 }
  0x39   : > { %2723 = sst [smem:[#allocation33_spill]] %s2722_s18  ;;  %s389_s29 = sand.u32 1, %s1866_s22  }
  0x3a   : > { %s2071_s12 = scalar_select %p85_p4, %s1834_s14, %s87_s24  }
  0x3b   : > { %s391_s13 = sand.u32 1, %s1834_s14   ;;  %s401_s2 = sadd.s32 %s2068_s27, %s2796_s26 }
  0x3c   : > { %2724 = sst [smem:[#allocation34_spill]] %s2071_s12  ;;  %s1267_s8 = sshll.u32 %s391_s13, 3 }
  0x3d   : > { %s1271_s25 = sshll.u32 %s401_s2, 3  ;;  %s2725_s1 = sld [smem:[#allocation37_spill]] }
  0x3e   : > { %s393_s18 = scalar_lea.vmem [#allocation5], %s1267_s8  ;;  %p1374_p9 = pnand %p2694_p8, %p2050_p13 }
  0x3f   : > { %s407_s10 = sshll.u32 %s393_s18, 4  ;;  %s2726_s5 = sld [smem:[#allocation41_spill]]  ;;  %s408_s10 = int_to_ptr.vmem [resolvable:$true] %s407_s10 }
  0x40   : > { %s2088_s0 = scalar_lea.sflag [#allocation6], %s389_s29  ;;  %s1871_s3 = smov [#allocation10]  }
  0x41   : > { %s331_s30 = sshll.u32 %s1871_s3, 4  ;;  %s2727_s7 = sld [smem:[#allocation43_spill]]  ;;  %s332_s30 = int_to_ptr.vmem [resolvable:$true] %s331_s30 }
  0x42   : > { %s2728_s26 = smov 8   ;;  %s2729_s6 = smov 128  }
  0x43   : > { %s403_s19 = scalar_lea.hbm %s2725_s1, %s1271_s25  ;;  %s1872_s29 = smov [#allocation11]  }
  0x44   : > { %s405_s4 = sshll.u32 %s403_s19, 4  ;;  %s51_s8 = sadd.s32 1, %s1846_s17  ;;  %s406_s4 = int_to_ptr.hbm [resolvable:$true] %s405_s4 }
  0x45   : > { %s329_s2 = sshll.u32 %s2726_s5, 4  ;;  %p58_p10 = scmp.ne.s32.totalorder %s1846_s17, %s1842_s16  ;;  %s330_s2 = int_to_ptr.hbm [resolvable:$true] %s329_s2 }
  0x46   : > { %1376 = dma.hbm_to_vmem [thread:$0]  (!%p1374_p9), %s406_s4, 128, %s408_s10, %s2088_s0  }
  0x47   : > { %s346_s25 = sshll.u32 %s2727_s7, 4  ;;  %s348_s4 = sshll.u32 %s1872_s29, 4  ;;  %s347_s25 = int_to_ptr.hbm [resolvable:$true] %s346_s25  ;;  %s349_s4 = int_to_ptr.vmem [resolvable:$true] %s348_s4 }
  0x48   : > { %1366 = dma.hbm_to_vmem [thread:$0]  (!%p2013_p5), %s330_s2, 256, %s332_s30, [#allocation9], %s2729_s6, %s2729_s6, %s2728_s26  }
  0x49   : > { %1369 = dma.hbm_to_vmem [thread:$0]  (!%p2013_p5), %s347_s25, 2048, %s349_s4, [#allocation12], %s2729_s6, %s2729_s6, %s2728_s26  }
  0x4a   : > { %s1251_s10 = sadd.s32 4294967294, %s1866_s22   ;;  %p2115_p12 = por %p59_p7, %p58_p10 }
  0x4b   : > { %s2111_s19 = scalar_select %p49_p11, %s1846_s17, %s51_s8  }
  0x4c   : > { %p64_p13 = scmp.ne.s32.totalorder %s1842_s16, %s1838_s15  ;;  %p288_p0 = scmp.eq.s32.totalorder %s1997_s23, 3 }
  0x4d   : > { %2730 = sst [smem:[#allocation35_spill]] %s2111_s19  ;;  %p294_p4 = scmp.eq.s32.totalorder %s1251_s10, 3 }
  0x4e   : > { %p2124_p9 = por %p65_p1, %p64_p13  ;;  %s365_s2 = sand.u32 1, %s1846_s17  }
  0x4f   : > { %p2129_p5 = por %p288_p0, %p58_p10  ;;  %s2734_s3 = sld [smem:[#allocation32_spill]] }
  0x50   : > { %p2133_p11 = por %p294_p4, %p64_p13  ;;  %s1263_s13 = sshll.u32 %s365_s2, 5 }
  0x51   : > { %s2736_s18 = sadd.s32 %s2068_s27, %s2026_s28  ;;  %s2737_s25 = sld [smem:[#allocation21_spill]] }
  0x52   : > { %s1266_s29 = sshll.u32 %s2736_s18, 3  ;;  %s2738_s8 = sld [smem:[#allocation36_spill]] }
  0x53   : > { %s2739_s1 = sld [smem:[#allocation20_spill]]  ;;  %s369_s7 = scalar_lea.vmem [#allocation2], %s1263_s13 }
  0x54   : > { %s379_s21 = sshll.u32 %s369_s7, 4  ;;  %s2740_s19 = sld [smem:[#allocation31_spill]]  ;;  %s380_s21 = int_to_ptr.vmem [resolvable:$true] %s379_s21 }
  0x55   : > { %p1371_p10 = pnand %p2694_p8, %p2115_p12  ;;  %s366_s12 = scalar_lea.sflag [#allocation3], %s365_s2 }
  0x56   : > { %s1303_s18 = sadd.s32 4, %s2026_s28  ;;  %s123_s13 = sadd.s32 1, %s1822_s11 }
  0x57   : > { %p112_p13 = scmp.lt.s32.totalorder %s1303_s18, 7  ;;  %s2800_s3 = smov (!%p116_p6, %s2734_s3), 7 }
  0x58   : > { %s376_s5 = scalar_lea.hbm %s2738_s8, %s1266_s29  ;;  %p130_p0 = scmp.ne.s32.totalorder %s1822_s11, %s2737_s25 }
  0x59   : > { %s377_s17 = sshll.u32 %s376_s5, 4  ;;  %s2802_s18 = smov (!%p112_p13, %s1303_s18), 7  ;;  %s378_s17 = int_to_ptr.hbm [resolvable:$true] %s377_s17 }
  0x5a   : > { %1373 = dma.hbm_to_vmem [thread:$0]  (!%p1371_p10), %s378_s17, 512, %s380_s21, %s366_s12, %s2729_s6, %s2729_s6, %s2728_s26  }
  0x5b   : > { %p136_p4 = scmp.ne.s32.totalorder %s2737_s25, %s2739_s1  ;;  %s119_s5 = ssub.s32 %s2802_s18, %s2800_s3 }
  0x5c   : > { %s416_s7 = sand.u32 1, %s1822_s11   ;;  %s120_s24 = sor.u32 %s119_s5, %s2740_s19 }
  0x5d   : > { %p2163_p12 = por %p130_p0, %p59_p7  ;;  %p121_p10 = scmp.eq.s32.totalorder %s120_s24, 0 }
  0x5e   : > { %p2169_p8 = por %p136_p4, %p65_p1  ;;  %s1272_s21 = sshll.u32 %s416_s7, 3 }
  0x5f   : > { %s426_s28 = sadd.s32 %s2068_s27, %s2802_s18  ;;  %s2743_s19 = sld [smem:[#allocation38_spill]] }
  0x60   : > { %s2175_s1 = scalar_select %p121_p10, %s1822_s11, %s123_s13  }
  0x61   : > { %s1275_s12 = sshll.u32 %s426_s28, 3  ;;  %s418_s25 = scalar_lea.vmem [#allocation7], %s1272_s21 }
  0x62   : > { %s432_s29 = sshll.u32 %s418_s25, 4  ;;  %p2744_p7 = scmp.lt.s32.totalorder %s1866_s22, 4  ;;  %s433_s29 = int_to_ptr.vmem [resolvable:$true] %s432_s29 }
  0x63   : > { %441 = sbr.rel (%p2005_p3) target bundleno = 532 (0x214), region = 56  ;;  %s2188_s27 = sand.u32 (!%p2005_p3), 1, %s1842_s16  }
  0x64   : > { %p1377_p6 = pnand %p2744_p7, %p2163_p12  ;;  %s1277_s8 = sshll.u32 (!%p2005_p3), %s2188_s27, 5 }
  0x65   : > { %s428_s3 = scalar_lea.hbm %s2743_s19, %s1275_s12  ;;  %s444_s18 = scalar_lea.sflag (!%p2005_p3), [#allocation3], %s2188_s27 }
  0x66   : > { %s430_s4 = sshll.u32 %s428_s3, 4  ;;  %s2194_s13 = scalar_lea.vmem (!%p2005_p3), [#allocation2], %s1277_s8  ;;  %s431_s4 = int_to_ptr.hbm [resolvable:$true] %s430_s4 }
  0x67   : > { %1379 = dma.hbm_to_vmem [thread:$0]  (!%p1377_p6), %s431_s4, 128, %s433_s29, %s2088_s0  }
  0x68   : > { %1789 = dma.done.wait (%p2124_p9), %s444_s18, 512  }
  0x69   : > { %1791 = vsyncadd (%p2124_p9), %s444_s18, 4294966784  ;;  %s2746_s0 = sld [smem:[#allocation22_spill]]  ;;  %s453_s7 = sand.u32 1, %s1997_s23  }
  0x6a   : > { %s454_s21 = scalar_lea.sflag [#allocation6], %s453_s7 }
  0x6f   : > { %s455_s24 = sand.u32 1, %s2746_s0  }
  0x70   : > { %s2202_s2 = sshll.u32 %s455_s24, 3 }
  0x71   : > { %s457_s28 = scalar_lea.vmem [#allocation5], %s2202_s2 }
  0x72   : > { %1793 = dma.done.wait (%p2061_p2), %s454_s21, 128  }
  0x73   : > { %1795 = vsyncadd (%p2061_p2), %s454_s21, 4294967168  ;;  %s2748_s12 = sld [smem:[#allocation21_spill]] }
  0x79   : > { %s465_s26 = sand.u32 1, %s2748_s12  }
  0x7a   : > { %s2210_s9 = sshll.u32 %s465_s26, 3 }
  0x7b   : > { %s467_s6 = scalar_lea.vmem [#allocation7], %s2210_s9 }
  0x7c   : > { %1797 = dma.done.wait (%p2169_p8), %s454_s21, 128  }
  0x7d   : > { %1799 = vsyncadd (%p2169_p8), %s454_s21, 4294967168 }
  0x7e   : > { %1801 = dma.done.wait (%p65_p1), [#allocation9], 2304  }
  0x7f   : > { %1803 = vsyncadd (%p65_p1), [#allocation9], 4294964992 }
  0x80   : > { %1805 = dma.done.wait (%p65_p1), [#allocation12], 2048  }
  0x81   : > { %1807 = vsyncadd (%p65_p1), [#allocation12], 4294965248  ;;  %v553_v0 = vld [vmem:[#allocation8 + $0x78] sm:$0xff]  ;;  %v552_v1 = vld [vmem:[#allocation8 + $0x70] sm:$0xff]  ;;  %s2749_s23 = sld [smem:[#allocation24_spill]]  ;;  %v625_v24 = vlaneseq  ;;  %s527_s21 = scalar_lea.vmem [#allocation13], %s1277_s8 }
  0x82   : > { %584 = vmatpush.msra.mxu0 %v553_v0  ;;  %1308 = vmatpush.msra.mxu2 %v553_v0  ;;  %v551_v2 = vld [vmem:[#allocation8 + $0x68] sm:$0xff]  ;;  %v550_v3 = vld [vmem:[#allocation8 + $0x60] sm:$0xff]  ;;  %v549_v4 = vld [vmem:[#allocation8 + $0x58] sm:$0xff]  ;;  %s2750_s25 = sld [smem:[#allocation40_spill]]  ;;  %v1873_v0 = vmov 0.0   ;;  %s1067_s8 = scalar_lea.sflag [#allocation4], %s2188_s27 }
  0x83   : > { %v548_v5 = vld [vmem:[#allocation8 + $0x50] sm:$0xff]  ;;  %v547_v6 = vld [vmem:[#allocation8 + $0x48] sm:$0xff]  ;;  %v546_v7 = vld [vmem:[#allocation8 + $0x40] sm:$0xff]  ;;  %v2240_v26 = vshrl.u32 %v625_v24, 7  ;;  %s2767_s0 = sld [smem:[#allocation42_spill]] }
  0x84   : > { %585 = vmatpush.msra.mxu0 %v552_v1  ;;  %1309 = vmatpush.msra.mxu2 %v552_v1  ;;  %v545_v8 = vld [vmem:[#allocation8 + $0x38] sm:$0xff]  ;;  %v544_v9 = vld [vmem:[#allocation8 + $0x30] sm:$0xff]  ;;  %v543_v10 = vld [vmem:[#allocation8 + $0x28] sm:$0xff]  ;;  %s2768_s5 = sld [smem:[#allocation25_spill]] }
  0x85   : > { %v542_v11 = vld [vmem:[#allocation8 + $0x20] sm:$0xff]  ;;  %v541_v12 = vld [vmem:[#allocation8 + $0x18] sm:$0xff]  ;;  %v540_v13 = vld [vmem:[#allocation8 + $0x10] sm:$0xff]  ;;  %v627_v29 = vadd.s32 8, %v2240_v26  ;;  %v2245_v30 = vadd.s32 16, %v2240_v26  ;;  %vm670_vm0 = vcmp.lt.s32.totalorder %v2240_v26, 1 }
  0x86   : > { %586 = vmatpush.msra.mxu0 %v551_v2  ;;  %1310 = vmatpush.msra.mxu2 %v551_v2  ;;  %v539_v14 = vld [vmem:[#allocation8 + $0x8] sm:$0xff]  ;;  %v538_v15 = vld [vmem:[#allocation8] sm:$0xff]  ;;  %v578_v19 = vld [vmem:[%s2194_s13 + $0x10] sm:$0xff]  ;;  %vm683_vm1 = vcmp.lt.s32.totalorder %v2240_v26, 7  ;;  %v694_v61 = vand.u32 7, %v2240_v26  ;;  %s2769_s2 = sld [smem:[#allocation44_spill]] }
  0x87   : > { %v575_v16 = vld [vmem:[%s457_s28] sm:$0xff]  ;;  %v579_v20 = vld [vmem:[%s2194_s13 + $0x18] sm:$0xff]  ;;  %p619_p1 = scmp.gt.s32.totalorder %s2749_s23, 0  ;;  %p622_p3 = scmp.lt.s32.totalorder %s2749_s23, 1  ;;  %v701_v39 = vand.u32 7, %v627_v29  ;;  %v708_v40 = vand.u32 7, %v2245_v30 }
  0x88   : > { %587 = vmatpush.msra.mxu0 %v550_v3  ;;  %1311 = vmatpush.msra.mxu2 %v550_v3  ;;  %v577_v17 = vld [vmem:[%s2194_s13 + $0x8] sm:$0xff]  ;;  %v576_v18 = vld [vmem:[%s2194_s13] sm:$0xff]  ;;  %v580_v21 = vld [vmem:[%s467_s6] sm:$0xff]  ;;  %vm2395_vm6 = vcmp.gt.s32.totalorder %v694_v61, 0  ;;  %vm2442_vm9 = vcmp.lt.s32.totalorder %v694_v61, 7  ;;  %s1297_s28 = sshll.u32 %s2749_s23, 2 }
  0x89   : > { %s620_s17 = scalar_select %p619_p1, 1, 0  ;;  %v2237_v22 = vld [vmem:[%s2750_s25] ss:$0 sm:$0xff]  ;;  %v573_v33 = vld [vmem:[#allocation11 + $0x78] sm:$0xff]  ;;  %v571_v38 = vld [vmem:[#allocation11 + $0x68] sm:$0xff] }
  0x8a   : > { %588 = vmatpush.msra.mxu0 %v549_v4  ;;  %1312 = vmatpush.msra.mxu2 %v549_v4  ;;  %v572_v34 = vld [vmem:[#allocation11 + $0x70] sm:$0xff]  ;;  %s2249_s4 = scalar_select %p622_p3, 1, 0  ;;  %v570_v45 = vld [vmem:[#allocation11 + $0x60] sm:$0xff]  ;;  %v569_v50 = vld [vmem:[#allocation11 + $0x58] sm:$0xff]  ;;  %vm2272_vm2 = vcmp.gt.s32.totalorder %v701_v39, 0 }
  0x8b   : > { %s621_s29 = scvt.s32.f32 %s620_s17  ;;  %v555_v35 = vld [vmem:[#allocation10] sm:$0xff]  ;;  %1324 = vmatpush.msra.mxu3 %v573_v33  ;;  %1033 = vmatpush.msra.mxu1 %v573_v33  ;;  %vm2276_vm3 = vcmp.lt.s32.totalorder %v701_v39, 7  ;;  %vm2286_vm4 = vcmp.gt.s32.totalorder %v708_v40, 0  ;;  %v2307_v1 = vsel %vm2272_vm2, 1.0, %v1873_v0  ;;  %v565_v24 = vld [vmem:[#allocation11 + $0x38] sm:$0xff]  ;;  %vm2355_vm5 = vcmp.lt.s32.totalorder %v708_v40, 7 }
  0x8c   : > { %589 = vmatpush.msra.mxu0 %v548_v5  ;;  %1313 = vmatpush.msra.mxu2 %v548_v5  ;;  %v2259_v42 = vperm.slane %v555_v35, 1  ;;  %v2261_v43 = vperm.slane %v555_v35, 7  ;;  %v2266_v46 = vperm.slane %v555_v35, 4  ;;  %v2268_v47 = vperm.slane %v555_v35, 0  ;;  %s624_s10 = scvt.s32.f32 %s2249_s4  ;;  %v568_v60 = vld [vmem:[#allocation11 + $0x50] sm:$0xff]  ;;  %v567_v5 = vld [vmem:[#allocation11 + $0x48] sm:$0xff] }
  0x8d   : > { %v651_v27 = vstv %s621_s29  ;;  %1325 = vmatpush.msra.mxu3 %v572_v34  ;;  %1034 = vmatpush.msra.mxu1 %v572_v34  ;;  %v2280_v53 = vperm.slane %v555_v35, 3  ;;  %v2282_v54 = vperm.slane %v555_v35, 6  ;;  %v2284_v55 = vperm.slane %v555_v35, 2  ;;  %v563_v52 = vld [vmem:[#allocation11 + $0x28] sm:$0xff]  ;;  %s1298_s12 = sshll.u32 %s2768_s5, 3  ;;  %s2770_s19 = sld [smem:[#allocation45_spill]] }
  0x8e   : > { %590 = vmatpush.msra.mxu0 %v547_v6  ;;  %1314 = vmatpush.msra.mxu2 %v547_v6  ;;  %v2296_v59 = vperm.slane %v555_v35, 5  ;;  %v2302_v63 = vstv %s624_s10  ;;  %v2312_v2 = vsel %vm2276_vm3, 1.0, %v1873_v0  ;;  %v2319_v6 = vsel %vm2286_vm4, 1.0, %v1873_v0  ;;  %s1078_s26 = sadd.s32 %s1298_s12, %s1297_s28  ;;  %s1081_s29 = sshll.u32 %s527_s21, 4  ;;  %s1082_s29 = int_to_ptr.vmem [resolvable:$true] %s1081_s29 }
  0x8f   : > { %1326 = vmatpush.msra.mxu3 %v571_v38  ;;  %1035 = vmatpush.msra.mxu1 %v571_v38  ;;  %v564_v38 = vld [vmem:[#allocation11 + $0x30] sm:$0xff]  ;;  %s1299_s9 = sshll.u32 %s1078_s26, 3 }
  0x90   : > { %591 = vmatpush.msra.mxu0 %v546_v7  ;;  %1315 = vmatpush.msra.mxu2 %v546_v7  ;;  %v2322_v7 = vadd.s32 24, %v2240_v26 }
  0x91   : > { %1327 = vmatpush.msra.mxu3 %v570_v45  ;;  %1036 = vmatpush.msra.mxu1 %v570_v45 }
  0x92   : > { %592 = vmatpush.msra.mxu0 %v545_v8  ;;  %1316 = vmatpush.msra.mxu2 %v545_v8 }
  0x93   : > { %1328 = vmatpush.msra.mxu3 %v569_v50  ;;  %1037 = vmatpush.msra.mxu1 %v569_v50  ;;  %s2771_s3 = smov %s2770_s19  ;;  %s1080_s25 = scalar_lea.hbm %s2770_s19, %s1299_s9 }
  0x94   : > { %593 = vmatpush.msra.mxu0 %v544_v9  ;;  %1317 = vmatpush.msra.mxu2 %v544_v9  ;;  %s1083_s4 = sshll.u32 %s1080_s25, 4  ;;  %s1084_s4 = int_to_ptr.hbm [resolvable:$true] %s1083_s4 }
  0x95   : > { %1329 = vmatpush.msra.mxu3 %v568_v60  ;;  %1038 = vmatpush.msra.mxu1 %v568_v60  ;;  %v2391_v60 = vld [vmem:[#allocation10 + $0x8] ss:$0 sm:$0xff]  ;;  %s1718_s23 = sshra.s32 %s1084_s4, 4  ;;  %s1719_s23 = int_to_ptr.hbm [resolvable:$true] %s1718_s23 }
  0x96   : > { %594 = vmatpush.msra.mxu0 %v543_v10  ;;  %1318 = vmatpush.msra.mxu2 %v543_v10  ;;  %s1720_s10 = scalar_lea.hbm %s1719_s23, 32  ;;  %p1725_p13 = scmp.lt.s32.totalorder %s1719_s23, %s2771_s3 }
  0x97   : > { %1330 = vmatpush.msra.mxu3 %v567_v5  ;;  %1039 = vmatpush.msra.mxu1 %v567_v5  ;;  %p1721_p2 = scmp.ne.s32.totalorder %s1719_s23, %s1720_s10 }
  0x98   : > { %595 = vmatpush.msra.mxu0 %v542_v11  ;;  %1319 = vmatpush.msra.mxu2 %v542_v11 }
  0x99   : > { %p1722_p8 = pnand %p1721_p2, %p2129_p5 }
  0x9a   : > { %596 = vmatpush.msra.mxu0 %v541_v12  ;;  %1320 = vmatpush.msra.mxu2 %v541_v12 }
  0x9b   : > { %p1723_p9 = pneg %p1722_p8 }
  0x9c   : > { %597 = vmatpush.msra.mxu0 %v540_v13  ;;  %1321 = vmatpush.msra.mxu2 %v540_v13 }
  0x9e   : > { %598 = vmatpush.msra.mxu0 %v539_v14  ;;  %1322 = vmatpush.msra.mxu2 %v539_v14 }
  0xa0   : > { %599 = vmatpush.msra.mxu0 %v538_v15  ;;  %1323 = vmatpush.msra.mxu2 %v538_v15 }
  0xa1   : > { %600 = vmatmul.f32.vlgmr.msra.gmra.mxu0 %v575_v16  ;;  %606 = vmatmul.f32.vlgmr.msra.gmra.mxu2 %v577_v17  ;;  %v566_v16 = vld [vmem:[#allocation11 + $0x40] sm:$0xff] }
  0xa2   : > { %1331 = vmatpush.msra.mxu3 %v566_v16  ;;  %1040 = vmatpush.msra.mxu1 %v566_v16  ;;  %v561_v16 = vld [vmem:[#allocation11 + $0x18] sm:$0xff] }
  0xa4   : > { %1332 = vmatpush.msra.mxu3 %v565_v24  ;;  %1041 = vmatpush.msra.mxu1 %v565_v24 }
  0xa6   : > { %1333 = vmatpush.msra.mxu3 %v564_v38  ;;  %1042 = vmatpush.msra.mxu1 %v564_v38 }
  0xa8   : > { %1334 = vmatpush.msra.mxu3 %v563_v52  ;;  %1043 = vmatpush.msra.mxu1 %v563_v52 }
  0xa9   : > { %603 = vmatmul.f32.gmra.mxu0 %v576_v18  ;;  %609 = vmatmul.f32.gmra.mxu2 %v578_v19 }
  0xb1   : > { %612 = vmatmul.f32.gmra.mxu2 %v579_v20 }
  0xb9   : > { %615 = vmatmul.f32.gmra.mxu2 %v580_v21 }
 0x11e   : > { %v601_v23 = vpop.f32.mrf.mxu0 }
 0x11f   : > { %v602_v25 = vadd.f32 %v2237_v22, %v601_v23 }
 0x121   : > { %v2247_v31 = vmul.f32 %v651_v27, %v602_v25 }
 0x123   : > { %v664_v41 = vrot.slane %v2247_v31, 7  ;;  %v677_v3 = vrot.slane %v2247_v31, 1  ;;  %v763_v12 = vmul.f32 %v2259_v42, %v2247_v31 }
 0x124   : > { %v607_v28 = vpop.f32.mrf.mxu2 }
 0x125   : > { %v2252_v36 = vadd.f32 %v2237_v22, %v607_v28  ;;  %v715_v28 = vand.u32 7, %v2322_v7 }
 0x126   : > { %v604_v32 = vpop.f32.mrf.mxu0 }
 0x127   : > { %v2255_v37 = vadd.f32 %v2237_v22, %v604_v32  ;;  %v666_v48 = vrot.slane %v2252_v36, 7  ;;  %v679_v13 = vrot.slane %v2252_v36, 1  ;;  %v2337_v17 = vmul.f32 %v2259_v42, %v2252_v36 }
 0x128   : > { %v2341_v18 = vmul.f32 %v2261_v43, %v2252_v36  ;;  %v769_v19 = vmul.f32 %v2266_v46, %v2252_v36  ;;  %vm2399_vm7 = vcmp.gt.s32.totalorder %v715_v28, 0  ;;  %vm2430_vm8 = vcmp.lt.s32.totalorder %v715_v28, 7 }
 0x129   : > { %v665_v44 = vrot.slane %v2255_v37, 7  ;;  %v678_v4 = vrot.slane %v2255_v37, 1  ;;  %v764_v14 = vmul.f32 %v2259_v42, %v2255_v37  ;;  %v768_v15 = vmul.f32 %v2266_v46, %v2255_v37 }
 0x12a   : > { %v1291_v61 = vsel %vm2430_vm8, 1.0, %v1873_v0 }
 0x12b   : > { %v674_v57 = vsel %vm670_vm0, %v665_v44, %v666_v48  ;;  %v675_v58 = vsel %vm670_vm0, %v664_v41, %v665_v44  ;;  %v687_v29 = vsel %vm683_vm1, %v678_v4, %v679_v13  ;;  %v688_v30 = vsel %vm683_vm1, %v677_v3, %v678_v4  ;;  %v558_v4 = vld [vmem:[#allocation11] sm:$0xff] }
 0x12c   : > { %v610_v49 = vpop.f32.mrf.mxu2  ;;  %v787_v8 = vmul.f32 %v2268_v47, %v675_v58  ;;  %v792_v9 = vmul.f32 %v2280_v53, %v674_v57  ;;  %v2369_v34 = vadd.f32 %v768_v15, %v763_v12  ;;  %v773_v35 = vadd.f32 %v769_v19, %v764_v14 }
 0x12d   : > { %v2300_v62 = vadd.f32 %v2237_v22, %v610_v49  ;;  %v788_v36 = vmul.f32 %v2268_v47, %v674_v57  ;;  %v2373_v37 = vmul.f32 %v2280_v53, %v675_v58  ;;  %v817_v49 = vmul.f32 %v2284_v55, %v688_v30 }
 0x12e   : > { %v796_v33 = vadd.f32 %v792_v9, %v787_v8  ;;  %v822_v50 = vmul.f32 %v2296_v59, %v687_v29  ;;  %v818_v56 = vmul.f32 %v2284_v55, %v687_v29  ;;  %v562_v9 = vld [vmem:[#allocation11 + $0x20] sm:$0xff] }
 0x12f   : > { %v667_v10 = vrot.slane %v2300_v62, 7  ;;  %v680_v11 = vrot.slane %v2300_v62, 1  ;;  %v778_v51 = vmul.f32 %v2261_v43, %v2300_v62  ;;  %v770_v5 = vmul.f32 %v2266_v46, %v2300_v62  ;;  %1335 = vmatpush.msra.mxu3 %v562_v9  ;;  %1044 = vmatpush.msra.mxu1 %v562_v9 }
 0x130   : > { %v766_v8 = vmul.f32 %v2259_v42, %v2300_v62  ;;  %v2423_v42 = vsel %vm2395_vm6, 1.0, %v1873_v0  ;;  %v826_v62 = vadd.f32 %v822_v50, %v817_v49 }
 0x131   : > { %v2347_v20 = vsel %vm670_vm0, %v666_v48, %v667_v10  ;;  %v2351_v21 = vsel %vm683_vm1, %v679_v13, %v680_v11  ;;  %v2380_v48 = vmul.f32 %v2282_v54, %v674_v57  ;;  %v782_v19 = vadd.f32 %v778_v51, %v773_v35  ;;  %v560_v35 = vld [vmem:[#allocation11 + $0x10] sm:$0xff]  ;;  %1336 = vmatpush.msra.mxu3 %v561_v16 }
 0x132   : > { %v801_v25 = vmul.f32 %v2282_v54, %v2347_v20  ;;  %v823_v45 = vmul.f32 %v2296_v59, %v2351_v21  ;;  %v793_v15 = vmul.f32 %v2280_v53, %v2347_v20  ;;  %v774_v30 = vadd.f32 %v770_v5, %v2337_v17  ;;  %1045 = vmatpush.msra.mxu1 %v561_v16 }
 0x133   : > { %v819_v38 = vmul.f32 %v2284_v55, %v2351_v21  ;;  %v831_v49 = vmul.f32 %v2391_v60, %v2351_v21  ;;  %v789_v50 = vmul.f32 %v2268_v47, %v2347_v20  ;;  %1337 = vmatpush.msra.mxu3 %v560_v35 }
 0x134   : > { %v613_v23 = vpop.f32.mrf.mxu2  ;;  %v805_v44 = vadd.f32 %v801_v25, %v796_v33  ;;  %v827_v13 = vadd.f32 %v823_v45, %v818_v56  ;;  %v797_v17 = vadd.f32 %v793_v15, %v788_v36  ;;  %v559_v45 = vld [vmem:[#allocation11 + $0x8] sm:$0xff]  ;;  %1046 = vmatpush.msra.mxu1 %v560_v35 }
 0x135   : > { %v2367_v32 = vadd.f32 %v2237_v22, %v613_v23  ;;  %1338 = vmatpush.msra.mxu3 %v559_v45 }
 0x136   : > { %v809_v12 = vmul.f32 %v2307_v1, %v805_v44  ;;  %v1287_v1 = vsel %vm2399_vm7, 1.0, %v1873_v0  ;;  %1047 = vmatpush.msra.mxu1 %v559_v45 }
 0x137   : > { %v668_v39 = vrot.slane %v2367_v32, 7  ;;  %v681_v40 = vrot.slane %v2367_v32, 1  ;;  %v771_v29 = vmul.f32 %v2266_v46, %v2367_v32  ;;  %v779_v21 = vmul.f32 %v2261_v43, %v2367_v32  ;;  %1339 = vmatpush.msra.mxu3 %v558_v4 }
 0x138   : > { %v813_v44 = vadd.f32 %v809_v12, %v782_v19  ;;  %1048 = vmatpush.msra.mxu1 %v558_v4 }
 0x139   : > { %v685_v58 = vsel %vm683_vm1, %v680_v11, %v681_v40  ;;  %v672_v7 = vsel %vm670_vm0, %v667_v10, %v668_v39  ;;  %v2414_v11 = vsel %vm2355_vm5, 1.0, %v1873_v0  ;;  %v775_v56 = vadd.f32 %v771_v29, %v766_v8 }
 0x13a   : > { %v832_v14 = vmul.f32 %v2391_v60, %v685_v58  ;;  %v802_v23 = vmul.f32 %v2282_v54, %v672_v7  ;;  %v794_v33 = vmul.f32 %v2280_v53, %v672_v7  ;;  %v824_v53 = vmul.f32 %v2296_v59, %v685_v58 }
 0x13b   : > { %v820_v57 = vmul.f32 %v2284_v55, %v685_v58 }
 0x13c   : > { %v616_v10 = vpop.f32.mrf.mxu2  ;;  %v836_v25 = vadd.f32 %v832_v14, %v827_v13  ;;  %v806_v36 = vadd.f32 %v802_v23, %v797_v17  ;;  %v798_v5 = vadd.f32 %v794_v33, %v789_v50  ;;  %v783_v13 = vadd.f32 %v779_v21, %v774_v30 }
 0x13d   : > { %v617_v24 = vadd.f32 %v2237_v22, %v616_v10  ;;  %v835_v14 = vadd.f32 %v831_v49, %v826_v62  ;;  %v1288_v23 = vsel %vm2442_vm9, 1.0, %v1873_v0 }
 0x13e   : > { %v840_v46 = vmul.f32 %v2312_v2, %v836_v25  ;;  %v1514_v2 = vld [vmem:[%s2767_s0] ss:$0 sm:$0xff]  ;;  %v810_v31 = vmul.f32 %v2319_v6, %v806_v36  ;;  %s1724_s0 = scalar_lea.hbm %s2771_s3, 128 }
 0x13f   : > { %v663_v28 = vmul.f32 %v2302_v63, %v617_v24  ;;  %v781_v24 = vadd.f32 %v2341_v18, %v2369_v34  ;;  %v839_v30 = vmul.f32 %v1288_v23, %v835_v14  ;;  %p1726_p0 = scmp.lt.s32.totalorder %s1724_s0, %s1720_s10 }
 0x140   : > { %v844_v52 = vadd.f32 %v840_v46, %v813_v44 }
 0x141   : > { %v669_v63 = vrot.slane %v663_v28, 7  ;;  %v682_v51 = vrot.slane %v663_v28, 1  ;;  %v780_v58 = vmul.f32 %v2261_v43, %v663_v28  ;;  %p1727_p4 = por %p1726_p0, %p1725_p13 }
 0x142   : > { %v2483_v32 = vadd.f32 %v1514_v2, %v844_v52 }
 0x143   : > { %v671_v20 = vsel %vm670_vm0, %v668_v39, %v669_v63  ;;  %v676_v7 = vsel %vm670_vm0, %v669_v63, %v664_v41  ;;  %v684_v8 = vsel %vm683_vm1, %v681_v40, %v682_v51  ;;  %v689_v55 = vsel %vm683_vm1, %v682_v51, %v677_v3  ;;  %p1728_p12 = pnand %p1727_p4, %p1723_p9 }
 0x144   : > { %v786_v39 = vmul.f32 %v2268_v47, %v676_v7  ;;  %v803_v9 = vmul.f32 %v2282_v54, %v671_v20  ;;  %v825_v12 = vmul.f32 %v2296_v59, %v684_v8  ;;  %v833_v41 = vmul.f32 %v2391_v60, %v684_v8 }
 0x145   : > { %v828_v40 = vadd.f32 %v824_v53, %v819_v38  ;;  %v834_v3 = vmul.f32 %v2391_v60, %v689_v55  ;;  %v2489_v54 = vmul.f32 0.70710677, %v2483_v32  ;;  %v784_v15 = vadd.f32 %v780_v58, %v775_v56 }
 0x146   : > { %v795_v26 = vadd.f32 %v2373_v37, %v786_v39  ;;  %v807_v43 = vadd.f32 %v803_v9, %v798_v5  ;;  %v829_v47 = vadd.f32 %v825_v12, %v820_v57  ;;  %v814_v37 = vadd.f32 %v810_v31, %v783_v13 }
 0x147   : > { %v837_v59 = vadd.f32 %v833_v41, %v828_v40  ;;  %v902_v6 = vmul.f32 %v2489_v54, %v2489_v54 }
 0x148   : > { %v804_v10 = vadd.f32 %v2380_v48, %v795_v26  ;;  %v811_v16 = vmul.f32 %v1287_v1, %v807_v43  ;;  %v838_v19 = vadd.f32 %v834_v3, %v829_v47 }
 0x149   : > { %v841_v60 = vmul.f32 %v2414_v11, %v837_v59  ;;  %v2501_v48 = vmin.f32 %v902_v6, 16.0 }
 0x14a   : > { %v808_v62 = vmul.f32 %v2423_v42, %v804_v10  ;;  %v815_v25 = vadd.f32 %v811_v16, %v784_v15  ;;  %v842_v27 = vmul.f32 %v1291_v61, %v838_v19 }
 0x14b   : > { %v845_v1 = vadd.f32 %v841_v60, %v814_v37  ;;  %v904_v35 = vmul.f32 2.1237322e-06, %v2501_v48  ;;  %v915_v11 = vmul.f32 3.8918573e-05, %v2501_v48 }
 0x14c   : > { %v812_v29 = vadd.f32 %v808_v62, %v781_v24  ;;  %v846_v33 = vadd.f32 %v842_v27, %v815_v25 }
 0x14d   : > { %v2505_v38 = vadd.f32 %v1514_v2, %v845_v1  ;;  %v905_v18 = vadd.f32 0.00028619796, %v904_v35  ;;  %v916_v34 = vadd.f32 0.001143296, %v915_v11 }
 0x14e   : > { %v843_v0 = vadd.f32 %v839_v30, %v812_v29  ;;  %v2507_v22 = vadd.f32 %v1514_v2, %v846_v33 }
 0x14f   : > { %v2510_v42 = vmul.f32 0.70710677, %v2505_v38  ;;  %v906_v46 = vmul.f32 %v905_v18, %v2501_v48  ;;  %v917_v17 = vmul.f32 %v916_v34, %v2501_v48 }
 0x150   : > { %v2512_v28 = vadd.f32 %v1514_v2, %v843_v0  ;;  %v2515_v44 = vmul.f32 0.70710677, %v2507_v22 }
 0x151   : > { %v942_v53 = vmul.f32 %v2510_v42, %v2510_v42  ;;  %v907_v61 = vadd.f32 0.0036580483, %v906_v46  ;;  %v918_v50 = vadd.f32 0.014752088, %v917_v17 }
 0x152   : > { %v2522_v45 = vmul.f32 0.70710677, %v2512_v28  ;;  %v982_v49 = vmul.f32 %v2515_v44, %v2515_v44 }
 0x153   : > { %v2526_v63 = vmin.f32 %v942_v53, 16.0  ;;  %v908_v2 = vmul.f32 %v907_v61, %v2501_v48  ;;  %v919_v36 = vmul.f32 %v918_v50, %v2501_v48 }
 0x154   : > { %v862_v51 = vmul.f32 %v2522_v45, %v2522_v45  ;;  %v2530_v52 = vmin.f32 %v982_v49, 16.0 }
 0x155   : > { %v944_v56 = vmul.f32 2.1237322e-06, %v2526_v63  ;;  %v955_v21 = vmul.f32 3.8918573e-05, %v2526_v63  ;;  %v920_v4 = vadd.f32 0.112945676, %v919_v36 }
 0x156   : > { %v2536_v57 = vmin.f32 %v862_v51, 16.0  ;;  %v984_v5 = vmul.f32 2.1237322e-06, %v2530_v52  ;;  %v909_v55 = vadd.f32 0.05243302, %v908_v2 }
 0x157   : > { %v945_v20 = vadd.f32 0.00028619796, %v944_v56  ;;  %v956_v7 = vadd.f32 0.001143296, %v955_v21  ;;  %v921_v58 = vmul.f32 %v920_v4, %v2501_v48  ;;  %v995_v40 = vmul.f32 3.8918573e-05, %v2530_v52 }
 0x158   : > { %v864_v8 = vmul.f32 2.1237322e-06, %v2536_v57  ;;  %v875_v39 = vmul.f32 3.8918573e-05, %v2536_v57  ;;  %v985_v9 = vadd.f32 0.00028619796, %v984_v5  ;;  %v910_v15 = vmul.f32 %v909_v55, %v2501_v48 }
 0x159   : > { %v946_v12 = vmul.f32 %v945_v20, %v2526_v63  ;;  %v957_v41 = vmul.f32 %v956_v7, %v2526_v63  ;;  %v922_v26 = vadd.f32 0.4994258, %v921_v58  ;;  %v996_v14 = vadd.f32 0.001143296, %v995_v40 }
 0x15a   : > { %v865_v31 = vadd.f32 0.00028619796, %v864_v8  ;;  %v876_v3 = vadd.f32 0.001143296, %v875_v39  ;;  %v986_v43 = vmul.f32 %v985_v9, %v2530_v52  ;;  %v911_v1 = vadd.f32 0.18741608, %v910_v15 }
 0x15b   : > { %v947_v47 = vadd.f32 0.0036580483, %v946_v12  ;;  %v958_v13 = vadd.f32 0.014752088, %v957_v41  ;;  %v923_v10 = vmul.f32 %v922_v26, %v2501_v48  ;;  %v997_v60 = vmul.f32 %v996_v14, %v2530_v52 }
 0x15c   : > { %v866_v59 = vmul.f32 %v865_v31, %v2536_v57  ;;  %v877_v16 = vmul.f32 %v876_v3, %v2536_v57  ;;  %v987_v37 = vadd.f32 0.0036580483, %v986_v43  ;;  %v912_v17 = vmul.f32 %v911_v1, %v2501_v48 }
 0x15d   : > { %v948_v19 = vmul.f32 %v947_v47, %v2526_v63  ;;  %v959_v6 = vmul.f32 %v958_v13, %v2526_v63  ;;  %v924_v23 = vadd.f32 1.0, %v923_v10  ;;  %v998_v27 = vadd.f32 0.014752088, %v997_v60 }
 0x15e   : > { %v867_v24 = vadd.f32 0.0036580483, %v866_v59  ;;  %v878_v62 = vadd.f32 0.014752088, %v877_v16  ;;  %v988_v11 = vmul.f32 %v987_v37, %v2530_v52  ;;  %v913_v20 = vadd.f32 1.1283791, %v912_v17 }
 0x15f   : > { %v960_v25 = vadd.f32 0.112945676, %v959_v6  ;;  %1516 = vrcp.f32 %v924_v23  ;;  %v949_v29 = vadd.f32 0.05243302, %v948_v19  ;;  %v999_v0 = vmul.f32 %v998_v27, %v2530_v52 }
 0x160   : > { %v868_v33 = vmul.f32 %v867_v24, %v2536_v57  ;;  %v879_v35 = vmul.f32 %v878_v62, %v2536_v57  ;;  %v989_v2 = vadd.f32 0.05243302, %v988_v11  ;;  %v936_v48 = vand.u32 2147483648, %v924_v23 }
 0x161   : > { %v961_v30 = vmul.f32 %v960_v25, %v2526_v63  ;;  %v1000_v46 = vadd.f32 0.112945676, %v999_v0  ;;  %v950_v53 = vmul.f32 %v949_v29, %v2526_v63  ;;  %v934_v12 = vand.u32 2147483647, %v924_v23 }
 0x162   : > { %v880_v34 = vadd.f32 0.112945676, %v879_v35  ;;  %v869_v50 = vadd.f32 0.05243302, %v868_v33  ;;  %v990_v39 = vmul.f32 %v989_v2, %v2530_v52  ;;  %vm930_vm11 = vweird.f32 %v924_v23 }
 0x163   : > { %v962_v18 = vadd.f32 0.4994258, %v961_v30  ;;  %v1001_v36 = vmul.f32 %v1000_v46, %v2530_v52  ;;  %v951_v8 = vadd.f32 0.18741608, %v950_v53  ;;  %v937_v43 = vor.u32 1.1754944e-38, %v936_v48 }
 0x164   : > { %v881_v51 = vmul.f32 %v880_v34, %v2536_v57  ;;  %v870_v55 = vmul.f32 %v869_v50, %v2536_v57  ;;  %v991_v13 = vadd.f32 0.18741608, %v990_v39  ;;  %v914_v14 = vmul.f32 %v913_v20, %v2489_v54 }
 0x165   : > { %v963_v49 = vmul.f32 %v962_v18, %v2526_v63  ;;  %v1517_v61 = vpop.eup %1516  ;;  %v1002_v5 = vadd.f32 0.4994258, %v1001_v36  ;;  %v952_v26 = vmul.f32 %v951_v8, %v2526_v63  ;;  %vm935_vm13 = vcmp.eq.f32.partialorder %v934_v12, 8.507059e+37 }
 0x166   : > { %v926_v56 = vmul.f32 %v1517_v61, %v924_v23  ;;  %v882_v4 = vadd.f32 0.4994258, %v881_v51  ;;  %vm931_vm10 = vweird.f32 %v1517_v61  ;;  %v871_v47 = vadd.f32 0.18741608, %v870_v55 }
 0x167   : > { %v964_v21 = vadd.f32 1.0, %v963_v49  ;;  %v1003_v41 = vmul.f32 %v1002_v5, %v2530_v52  ;;  %vm932_vm12 = vmor %vm930_vm11, %vm931_vm10  ;;  %v953_v6 = vadd.f32 1.1283791, %v952_v26  ;;  %v992_v60 = vmul.f32 %v991_v13, %v2530_v52  ;;  %v1515_v13 = vld [vmem:[%s2769_s2] ss:$0 sm:$0xff] }
 0x168   : > { %v927_v7 = vsub.f32 1.0, %v926_v56  ;;  %v883_v58 = vmul.f32 %v882_v4, %v2536_v57  ;;  %v872_v37 = vmul.f32 %v871_v47, %v2536_v57  ;;  %v855_v27 = vmul.f32 0.5, %v2483_v32 }
 0x169   : > { %1518 = vrcp.f32 %v964_v21  ;;  %v2570_v3 = vadd.f32 1.0, %v1003_v41  ;;  %v974_v24 = vand.u32 2147483647, %v964_v21  ;;  %v976_v62 = vand.u32 2147483648, %v964_v21 }
 0x16a   : > { %v928_v9 = vmul.f32 %v1517_v61, %v927_v7  ;;  %v2567_v31 = vadd.f32 1.0, %v883_v58  ;;  %v954_v30 = vmul.f32 %v953_v6, %v2510_v42  ;;  %vm970_vm15 = vweird.f32 %v964_v21 }
 0x16b   : > { %v873_v11 = vadd.f32 1.1283791, %v872_v37  ;;  %v993_v57 = vadd.f32 1.1283791, %v992_v60  ;;  %vm975_vm1 = vcmp.eq.f32.partialorder %v974_v24, 8.507059e+37  ;;  %v977_v18 = vor.u32 1.1754944e-38, %v976_v62 }
 0x16c   : > { %v929_v40 = vadd.f32 %v1517_v61, %v928_v9  ;;  %1520 = vrcp.f32 %v2567_v31  ;;  %v894_v46 = vand.u32 2147483647, %v2567_v31  ;;  %v896_v17 = vand.u32 2147483648, %v2567_v31 }
 0x16d   : > { %1522 = vrcp.f32 %v2570_v3  ;;  %v1014_v2 = vand.u32 2147483647, %v2570_v3  ;;  %v856_v36 = vmul.f32 0.5, %v2505_v38  ;;  %v874_v56 = vmul.f32 %v873_v11, %v2522_v45 }
 0x16e   : > { %v933_v15 = vsel %vm932_vm12, %v1517_v61, %v929_v40  ;;  %v1016_v61 = vand.u32 2147483648, %v2570_v3  ;;  %vm890_vm4 = vweird.f32 %v2567_v31  ;;  %v897_v5 = vor.u32 1.1754944e-38, %v896_v17 }
 0x16f   : > { %v1519_v59 = vpop.eup %1518  ;;  %v938_v10 = vsel %vm935_vm13, %v937_v43, %v933_v15  ;;  %vm1010_vm6 = vweird.f32 %v2570_v3  ;;  %vm895_vm7 = vcmp.eq.f32.partialorder %v894_v46, 8.507059e+37  ;;  %v994_v8 = vmul.f32 %v993_v57, %v2515_v44 }
 0x170   : > { %v966_v16 = vmul.f32 %v1519_v59, %v964_v21  ;;  %v939_v19 = vmul.f32 %v938_v10, %v914_v14  ;;  %vm971_vm14 = vweird.f32 %v1519_v59  ;;  %v1017_v48 = vor.u32 1.1754944e-38, %v1016_v61 }
 0x171   : > { %vm972_vm0 = vmor %vm970_vm15, %vm971_vm14  ;;  %vm1015_vm9 = vcmp.eq.f32.partialorder %v1014_v2, 8.507059e+37  ;;  %v854_v40 = vmul.f32 0.5, %v2512_v28  ;;  %v857_v43 = vmul.f32 0.5, %v2507_v22 }
 0x172   : > { %v967_v63 = vsub.f32 1.0, %v966_v16  ;;  %v1293_v23 = vclamps-f32 %v939_v19, 1.0  ;;  %v1521_v25 = vpop.eup %1520 }
 0x173   : > { %v1523_v1 = vpop.eup %1522  ;;  %v886_v33 = vmul.f32 %v1521_v25, %v2567_v31  ;;  %vm891_vm2 = vweird.f32 %v1521_v25 }
 0x174   : > { %v968_v54 = vmul.f32 %v1519_v59, %v967_v63  ;;  %v1023_v29 = vadd.f32 1.0, %v1293_v23  ;;  %v1006_v52 = vmul.f32 %v1523_v1, %v2570_v3  ;;  %vm1011_vm3 = vweird.f32 %v1523_v1  ;;  %vm892_vm5 = vmor %vm890_vm4, %vm891_vm2 }
 0x175   : > { %v887_v34 = vsub.f32 1.0, %v886_v33  ;;  %vm1012_vm8 = vmor %vm1010_vm6, %vm1011_vm3 }
 0x176   : > { %v969_v35 = vadd.f32 %v1519_v59, %v968_v54  ;;  %v1027_v0 = vmul.f32 %v1023_v29, %v855_v27  ;;  %v1007_v53 = vsub.f32 1.0, %v1006_v52 }
 0x177   : > { %v888_v49 = vmul.f32 %v1521_v25, %v887_v34 }
 0x178   : > { %v973_v32 = vsel %vm972_vm0, %v1519_v59, %v969_v35  ;;  %1052 = vmatmul.f32.vlgmr.msra.gmra.mxu3 %v1027_v0  ;;  %v1008_v51 = vmul.f32 %v1523_v1, %v1007_v53 }
 0x179   : > { %v978_v42 = vsel %vm975_vm1, %v977_v18, %v973_v32  ;;  %v889_v21 = vadd.f32 %v1521_v25, %v888_v49 }
 0x17a   : > { %v979_v50 = vmul.f32 %v978_v42, %v954_v30  ;;  %v1009_v20 = vadd.f32 %v1523_v1, %v1008_v51 }
 0x17b   : > { %v893_v7 = vsel %vm892_vm5, %v1521_v25, %v889_v21 }
 0x17c   : > { %v1294_v4 = vclamps-f32 %v979_v50, 1.0  ;;  %v898_v58 = vsel %vm895_vm7, %v897_v5, %v893_v7  ;;  %v1013_v38 = vsel %vm1012_vm8, %v1523_v1, %v1009_v20 }
 0x17d   : > { %v899_v45 = vmul.f32 %v898_v58, %v874_v56  ;;  %v1018_v39 = vsel %vm1015_vm9, %v1017_v48, %v1013_v38 }
 0x17e   : > { %v1024_v55 = vadd.f32 1.0, %v1294_v4  ;;  %v1019_v12 = vmul.f32 %v1018_v39, %v994_v8 }
 0x17f   : > { %v1292_v41 = vclamps-f32 %v899_v45, 1.0 }
 0x180   : > { %v1028_v9 = vmul.f32 %v1024_v55, %v856_v36  ;;  %v1295_v31 = vclamps-f32 %v1019_v12, 1.0 }
 0x181   : > { %v1022_v26 = vadd.f32 1.0, %v1292_v41 }
 0x182   : > { %1055 = vmatmul.f32.gmra.mxu3 %v1028_v9  ;;  %v1025_v44 = vadd.f32 1.0, %v1295_v31 }
 0x183   : > { %v1026_v3 = vmul.f32 %v1022_v26, %v854_v40 }
 0x184   : > { %v1029_v47 = vmul.f32 %v1025_v44, %v857_v43 }
 0x185   : > { %1049 = vmatmul.f32.vlgmr.msra.gmra.mxu1 %v1026_v3 }
 0x18a   : > { %1058 = vmatmul.f32.gmra.mxu3 %v1029_v47 }
 0x1fb   : > { %v1053_v59 = vpop.f32.mrf.mxu3 }
 0x1fc   : > { %v1054_v14 = vadd.f32 %v1515_v13, %v1053_v59 }
 0x1fe   : > { %1063 = vst [vmem:[%s527_s21 + $0x8] sm:$0xff] %v1054_v14 }
 0x202   : > { %v1050_v28 = vpop.f32.mrf.mxu1 }
 0x203   : > { %v1051_v15 = vadd.f32 %v1515_v13, %v1050_v28 }
 0x205   : > { %v1056_v10 = vpop.f32.mrf.mxu3  ;;  %1062 = vst [vmem:[%s527_s21] sm:$0xff] %v1051_v15 }
 0x206   : > { %v1057_v22 = vadd.f32 %v1515_v13, %v1056_v10 }
 0x208   : > { %1064 = vst [vmem:[%s527_s21 + $0x10] sm:$0xff] %v1057_v22 }
 0x20d   : > { %v1059_v16 = vpop.f32.mrf.mxu3 }
 0x20e   : > { %v1060_v19 = vadd.f32 %v1515_v13, %v1059_v16 }
 0x210   : > { %1065 = vst [vmem:[%s527_s21 + $0x18] sm:$0xff] %v1060_v19 }
 0x211   : > { %1731 = shalt.err (!%p1728_p12)
}
 0x212   : > { %s1874_s27 = smov 128   ;;  %s1875_s24 = smov 8  }
 0x213   : > { %1358 = dma.vmem_to_hbm [thread:$0]  (%p2129_p5), %s1082_s29, 512, %s1084_s4, %s1067_s8, %s1874_s27, %s1874_s27, %s1875_s24  }
 0x214 PF: > { %p1391_p10 = scmp.ge.s32.totalorder %s1866_s22, 2  ;;  %s1098_s2 = sand.u32 1, %s1838_s15  }
 0x215   : > { %s1099_s21 = scalar_lea.sflag [#allocation4], %s1098_s2 }
 0x216   : > { %p1381_p7 = pnand %p1391_p10, %p2133_p11 }
 0x218   : > { %p1382_p6 = pneg %p1381_p7 }
 0x21a   : > { %1809 = dma.done.wait (%p1382_p6), %s1099_s21, 512  }
 0x21b   : > { %1811 = vsyncadd (%p1382_p6), %s1099_s21, 4294966784  ;;  %s30_s22 = sadd.s32 1, %s1866_s22   ;;  %s2773_s30 = sld [smem:[#allocation21_spill]] }
 0x21c   : > { %p2618_p1 = scmp.ge.s32.totalorder %s30_s22, 6   ;;  %s2774_s12 = sld [smem:[#allocation22_spill]] }
 0x21d   : > { %s2775_s20 = sld [smem:[#allocation34_spill]]  ;;  %s2782_s10 = smov %s1822_s11 }
 0x21e   : > { %s2776_s26 = sld [smem:[#allocation23_spill]]  ;;  %s2783_s11 = smov %s2175_s1 }
 0x21f   : > { %s2777_s17 = sld [smem:[#allocation35_spill]]  ;;  %s2784_s13 = smov %s1834_s14 }
 0x220   : > { %s2778_s18 = sld [smem:[#allocation26_spill]]  ;;  %s2786_s15 = smov %s1842_s16 }
 0x221   : > { %s2779_s19 = sld [smem:[#allocation27_spill]] }
 0x222   : > { %s2780_s9 = sld [smem:[#allocation29_spill]] }
 0x223   : > { %s2781_s21 = sld [smem:[#allocation30_spill]]  ;;  %s2785_s14 = smov %s2775_s20 }
 0x224   : > { %s2787_s16 = smov %s2776_s26  ;;  %29 = sbr.rel (!%p2618_p1) target bundleno = 25 (0x19), region = 137 }
 0x228   : > { %s2788_s20 = smov %s2780_s9 }
 0x229   :  { %1105 = vsyncpa [#allocation3], 1 }
 0x22a   :  { %1107 = vsyncpa [#allocation3 + $0x1], 1 }
 0x22b   :  { %1108 = vsyncpa [#allocation6], 1 }
 0x22c   :  { %1110 = vsyncpa [#allocation6 + $0x1], 1 }
 0x22d   :  { %1111 = vsyncpa [#allocation9], 1 }
 0x22e   :  { %1112 = vsyncpa [#allocation12], 1 }
 0x22f   :  { %1113 = vsyncpa [#allocation4], 1 }
 0x230   :  { %1115 = vsyncpa [#allocation4 + $0x1], 1 }

</bundles_post_ra>
